<compile_context>
chip_gen: v6e
topology: v6e:2x2x1
jax: 0.10.0
libtpu: 0.0.40
codegen_flags: <defaults>
</compile_context>

<pallas_src>
import jax
import jax.numpy as jnp
from jax.experimental import pallas as pl
from jax.experimental.pallas import tpu as pltpu


def _silu(v):
    return v * jax.nn.sigmoid(v)


def _make_resnet_kernel(H, W, Cin, C, T, groups):
    Cg = C // groups
    WC = W * C
    WCin = W * Cin
    inv_n = 1.0 / float(Cg * H * W)     # GroupNorm element count per group
    f32 = jnp.float32
    bf16 = jnp.bfloat16
    HIGH = jax.lax.Precision.HIGHEST

    def kernel(x_ref, temb_ref, band1_ref, band2_ref, wm_ref, bres_ref,
               vecs_ref, gmask_ref, out_ref, xpad_ref, hpad_ref):
        vecs = vecs_ref[...]          # (8, WC) f32 pre-tiled per-lane vectors
        gmask = gmask_ref[...]        # (C, WC) f32 group-membership mask

        # Top/bottom halo rows only (left/right zero padding is folded into the
        # banded weight matrices).  Slab rows: [0,1]=0, [2,H+1]=data,
        # [H+2,H+3]=0 -- every store to the bf16 slabs is pair-aligned.
        xpad_ref[pl.ds(0, 2), :] = jnp.zeros((2, WCin), bf16)
        xpad_ref[pl.ds(H + 2, 2), :] = jnp.zeros((2, WCin), bf16)
        hpad_ref[pl.ds(0, 2), :] = jnp.zeros((2, WC), bf16)
        hpad_ref[pl.ds(H + 2, 2), :] = jnp.zeros((2, WC), bf16)

        x_rows = x_ref[...]                                   # (H, WCin) f32
        xpad_ref[pl.ds(2, H), :] = x_rows.astype(bf16)

        def conv3x3(pad_ref, band_ref):
            # out[y] = sum_dy pad[y + dy + 1] @ B_dy  (single-pass bf16 MXU,
            # f32 accumulation; no im2col, no relayouts).
            r = jnp.dot(pad_ref[pl.ds(1, H), :], band_ref[0],
                        preferred_element_type=f32)
            for dy in (1, 2):
                r = r + jnp.dot(pad_ref[pl.ds(dy + 1, H), :], band_ref[dy],
                                preferred_element_type=f32)
            return r                                          # (H, WC) f32

        def group_norm(h, gamma, beta):
            # h: (H, WC) f32.  Column sums (sublane reduce), then a log2(W)
            # lane fold leaves per-channel totals in lanes [0, C); one tiny
            # f32 (2,C)x(C,WC) mask matmul expands them to per-lane group
            # sums.  Statistics stay in f32 (review correctness item).
            s = jnp.concatenate(
                [jnp.sum(h, axis=0, keepdims=True),
                 jnp.sum(h * h, axis=0, keepdims=True)], axis=0)   # (2, WC)
            k = WC
            while k > C:                    # requires W to be a power of two
                k //= 2
                s = s[:, :k] + s[:, k:2 * k]
            g = jnp.dot(s, gmask, preferred_element_type=f32,
                        precision=HIGH)                            # (2, WC)
            mean = g[0:1] * inv_n
            var = jnp.maximum(g[1:2] * inv_n - mean * mean, 0.0)
            inv = jax.lax.rsqrt(var + 1e-5)
            return (h - mean) * (inv * gamma) + beta

        # --- block1: conv3x3 -> GroupNorm -> SiLU ---
        h = conv3x3(xpad_ref, band1_ref) + vecs[0:1]
        h = _silu(group_norm(h, vecs[1:2], vecs[2:3]))

        # --- time-embedding MLP: SiLU -> Linear (lane-pre-tiled weight) ---
        te = _silu(temb_ref[...])                                  # (1, T)
        te = jnp.dot(te, wm_ref[...], preferred_element_type=f32,
                     precision=HIGH) + vecs[3:4]                   # (1, WC)
        h = h + te

        # --- block2: conv3x3 -> GroupNorm -> SiLU ---
        hpad_ref[pl.ds(2, H), :] = h.astype(bf16)
        h2 = conv3x3(hpad_ref, band2_ref) + vecs[4:5]
        h2 = _silu(group_norm(h2, vecs[5:6], vecs[6:7]))

        # --- residual 1x1 conv straight from the original f32 input rows ---
        res = jnp.dot(x_rows, bres_ref[...], preferred_element_type=f32,
                      precision=HIGH) + vecs[7:8]

        out_ref[...] = (h2 + res).astype(out_ref.dtype)            # (H, WC)

    return kernel


def resnet_block_forward(x_nchw, time_emb, params, *, groups=8):
    B, Cin, H, W = x_nchw.shape
    C = params["w1"].shape[0]              # conv weight is (Cout, Cin, 3, 3)
    T = time_emb.shape[1]
    assert C % groups == 0
    assert W & (W - 1) == 0, "lane fold-reduce assumes W is a power of two"
    # TODO(synk): for non-power-of-two W fall back to a (2,WC)x(WC,C) mask matmul.
    WC, WCin = W * C, W * Cin
    f32, bf16 = jnp.float32, jnp.bfloat16

    # NCHW -> lane-dense row layout (B, H, W*Cin), lane index = x*Cin + ci.
    x_rows = jnp.transpose(x_nchw, (0, 2, 3, 1)).reshape(B, H, WCin).astype(f32)

    def conv_band_mats(w):
        # (Cout, cin, 3, 3) -> (3, W*cin, W*Cout);
        # B_dy[xin*cin + ci, x*Cout + co] = w[co, ci, dy, xin - x + 1]
        # for |xin - x| <= 1, else 0 (zero padding in x folded into the weights).
        Cout, cin = w.shape[0], w.shape[1]
        xs = jnp.arange(W)
        dxm = xs[:, None] - xs[None, :] + 1                    # (xin, x) -> dx
        valid = ((dxm >= 0) & (dxm <= 2)).astype(f32)
        dxc = jnp.clip(dxm, 0, 2)
        wt = jnp.transpose(w, (2, 1, 0, 3))                    # (dy, cin, Cout, dx)
        g = wt[:, :, :, dxc] * valid[None, None, None, :, :]   # (dy,cin,Cout,xin,x)
        g = jnp.transpose(g, (0, 3, 1, 4, 2))                  # (dy, xin, cin, x, Cout)
        return g.reshape(3, W * cin, W * Cout)

    band1 = conv_band_mats(params["w1"]).astype(bf16)          # (3, W*Cin, W*C)
    band2 = conv_band_mats(params["w2"]).astype(bf16)          # (3, W*C,   W*C)

    wres = params["wres"][:, :, 0, 0]                          # (C, Cin)
    bres = (jnp.eye(W, dtype=f32)[:, None, :, None] *
            wres.T.astype(f32)[None, :, None, :]).reshape(WCin, WC)  # f32 block-diag

    wm_wide = jnp.tile(params["wm"].T.astype(f32), (1, W))     # (T, W*C)

    # Pack the eight per-channel vectors as pre-tiled per-lane rows (8, W*C).
    vecs = jnp.tile(
        jnp.stack([params["b1"], params["g1"], params["be1"], params["bm"],
                   params["b2"], params["g2"], params["be2"], params["bres"]],
                  axis=0).astype(f32), (1, W))

    gid = jnp.arange(C) // (C // groups)
    gmask = jnp.tile((gid[:, None] == gid[None, :]).astype(f32), (1, W))  # (C, W*C)

    temb3 = time_emb.reshape(B, 1, T).astype(f32)

    kernel = _make_resnet_kernel(H, W, Cin, C, T, groups)

    out = pl.pallas_call(
        kernel,
        out_shape=jax.ShapeDtypeStruct((B, H, WC), f32),
        grid_spec=pltpu.PrefetchScalarGridSpec(
            num_scalar_prefetch=0,
            grid=(B,),
            in_specs=[
                pl.BlockSpec((None, H, WCin), lambda b: (b, 0, 0)),   # x rows
                pl.BlockSpec((None, 1, T), lambda b: (b, 0, 0)),      # time emb
                pl.BlockSpec((3, WCin, WC), lambda b: (0, 0, 0)),     # conv1 bands
                pl.BlockSpec((3, WC, WC), lambda b: (0, 0, 0)),       # conv2 bands
                pl.BlockSpec((T, WC), lambda b: (0, 0)),              # time weight
                pl.BlockSpec((WCin, WC), lambda b: (0, 0)),           # residual weight
                pl.BlockSpec((8, WC), lambda b: (0, 0)),              # biases/affine
                pl.BlockSpec((C, WC), lambda b: (0, 0)),              # group mask
            ],
            out_specs=pl.BlockSpec((None, H, WC), lambda b: (b, 0, 0)),
            scratch_shapes=[
                pltpu.VMEM((H + 4, WCin), bf16),    # x halo slab (top/bottom rows)
                pltpu.VMEM((H + 4, WC), bf16),      # h halo slab
            ],
        ),
        compiler_params=pltpu.CompilerParams(
            dimension_semantics=("parallel",),       # B=2 -> both TCs on v7x
            vmem_limit_bytes=8 * 1024 * 1024,        # honest budget (~1.5 MiB used)
        ),
    )(x_rows, temb3, band1, band2, wm_wide, bres, vecs, gmask)

    out = out.reshape(B, H, W, C)
    return jnp.transpose(out, (0, 3, 1, 2))          # back to NCHW


def ref_forward(x, time_emb, params, groups=8):
    """Pure-JAX f32 reference matching the PyTorch ResnetBlock forward."""
    def conv(x, w, b, pad):
        y = jax.lax.conv_general_dilated(
            x, w, (1, 1), [(pad, pad), (pad, pad)],
            dimension_numbers=("NCHW", "OIHW", "NCHW"),
            precision=jax.lax.Precision.HIGHEST)
        return y + b[None, :, None, None]

    def gn(x, gamma, beta):
        B, C, H, W = x.shape
        xg = x.reshape(B, groups, C // groups, H, W)
        mean = xg.mean(axis=(2, 3, 4), keepdims=True)
        var = ((xg - mean) ** 2).mean(axis=(2, 3, 4), keepdims=True)
        xg = (xg - mean) / jnp.sqrt(var + 1e-5)
        x = xg.reshape(B, C, H, W)
        return x * gamma[None, :, None, None] + beta[None, :, None, None]

    silu = lambda v: v * jax.nn.sigmoid(v)

    h = silu(gn(conv(x, params["w1"], params["b1"], 1),
                params["g1"], params["be1"]))
    te = silu(time_emb) @ params["wm"].T + params["bm"]
    h = h + te[:, :, None, None]
    h = silu(gn(conv(h, params["w2"], params["b2"], 1),
                params["g2"], params["be2"]))
    res = conv(x, params["wres"], params["bres"], 0)
    return h + res


if __name__ == "__main__":
    B, Cin, C, H, W, T, G = 2, 4, 16, 16, 16, 32, 8

    key = jax.random.PRNGKey(0)
    ks = jax.random.split(key, 16)
    p = {
        "w1": 0.1 * jax.random.normal(ks[0], (C, Cin, 3, 3), jnp.float32),
        "b1": 0.1 * jax.random.normal(ks[1], (C,), jnp.float32),
        "g1": 1.0 + 0.1 * jax.random.normal(ks[2], (C,), jnp.float32),
        "be1": 0.1 * jax.random.normal(ks[3], (C,), jnp.float32),
        "wm": 0.1 * jax.random.normal(ks[4], (C, T), jnp.float32),
        "bm": 0.1 * jax.random.normal(ks[5], (C,), jnp.float32),
        "w2": 0.1 * jax.random.normal(ks[6], (C, C, 3, 3), jnp.float32),
        "b2": 0.1 * jax.random.normal(ks[7], (C,), jnp.float32),
        "g2": 1.0 + 0.1 * jax.random.normal(ks[8], (C,), jnp.float32),
        "be2": 0.1 * jax.random.normal(ks[9], (C,), jnp.float32),
        "wres": 0.1 * jax.random.normal(ks[10], (C, Cin, 1, 1), jnp.float32),
        "bres": 0.1 * jax.random.normal(ks[11], (C,), jnp.float32),
    }
    x = jax.random.normal(ks[12], (B, Cin, H, W), jnp.float32)
    temb = jax.random.normal(ks[13], (B, T), jnp.float32)

    out = resnet_block_forward(x, temb, p, groups=G)
    out = jax.block_until_ready(out)

    ref = ref_forward(x, temb, p, groups=G)
    assert out.shape == ref.shape == (B, C, H, W)

    err_max = float(jnp.max(jnp.abs(out - ref)))
    rel_l2 = float(jnp.linalg.norm(out - ref) /
                   (jnp.linalg.norm(ref) + 1e-12))
    # f32 GroupNorm stats / f32 residual tightened the error budget; the
    # remaining gap to the HIGHEST-precision f32 reference is the single-pass
    # bf16-operand conv matmuls, hence ~1e-2-level tolerances.
    if err_max < 4e-2 and rel_l2 < 1e-2:
        print("KERNEL_OK")
    else:
        print(f"MISMATCH max_abs_err={err_max} rel_l2={rel_l2}")
</pallas_src>

<mosaic_0001>
module attributes {stable_mosaic.version = 11 : i64} {
  func.func @kernel(%arg0: i32, %arg1: memref<1x16x64xf32, #tpu.memory_space<vmem>>, %arg2: memref<1x1x32xf32, #tpu.memory_space<vmem>>, %arg3: memref<3x64x256xbf16, #tpu.memory_space<vmem>>, %arg4: memref<3x256x256xbf16, #tpu.memory_space<vmem>>, %arg5: memref<32x256xf32, #tpu.memory_space<vmem>>, %arg6: memref<64x256xf32, #tpu.memory_space<vmem>>, %arg7: memref<8x256xf32, #tpu.memory_space<vmem>>, %arg8: memref<16x256xf32, #tpu.memory_space<vmem>>, %arg9: memref<1x16x256xf32, #tpu.memory_space<vmem>>, %arg10: memref<20x64xbf16, #tpu.memory_space<vmem>>, %arg11: memref<20x256xbf16, #tpu.memory_space<vmem>>) attributes {dimension_semantics = [#tpu.dimension_semantics<parallel>], iteration_bounds = array<i64: 2>, scalar_prefetch = 0 : i64, scratch_operands = 2 : i64, tpu.core_type = #tpu.core_type<tc>, window_params = [{transform_indices = @transform_0, window_bounds = array<i64: 1, 16, 64>}, {transform_indices = @transform_1, window_bounds = array<i64: 1, 1, 32>}, {pipeline_mode = #tpu.pipeline_mode<synchronous>, transform_indices = @transform_2, window_bounds = array<i64: 3, 64, 256>}, {pipeline_mode = #tpu.pipeline_mode<synchronous>, transform_indices = @transform_3, window_bounds = array<i64: 3, 256, 256>}, {pipeline_mode = #tpu.pipeline_mode<synchronous>, transform_indices = @transform_4, window_bounds = array<i64: 32, 256>}, {pipeline_mode = #tpu.pipeline_mode<synchronous>, transform_indices = @transform_5, window_bounds = array<i64: 64, 256>}, {pipeline_mode = #tpu.pipeline_mode<synchronous>, transform_indices = @transform_6, window_bounds = array<i64: 8, 256>}, {pipeline_mode = #tpu.pipeline_mode<synchronous>, transform_indices = @transform_7, window_bounds = array<i64: 16, 256>}, {transform_indices = @transform_8, window_bounds = array<i64: 1, 16, 256>}]} {
    %c0 = arith.constant 0 : index
    %c0_0 = arith.constant 0 : index
    %0 = vector.load %arg7[%c0, %c0_0] : memref<8x256xf32, #tpu.memory_space<vmem>>, vector<8x256xf32>
    %c0_1 = arith.constant 0 : index
    %c0_2 = arith.constant 0 : index
    %1 = vector.load %arg8[%c0_1, %c0_2] : memref<16x256xf32, #tpu.memory_space<vmem>>, vector<16x256xf32>
    %cst = arith.constant 0.000000e+00 : bf16
    %2 = vector.broadcast %cst : bf16 to vector<2x64xbf16>
    %c0_3 = arith.constant 0 : index
    %c0_4 = arith.constant 0 : index
    %3 = vector.load %arg10[%c0_3, %c0_4] : memref<20x64xbf16, #tpu.memory_space<vmem>>, vector<2x64xbf16>
    tpu.vector_store %arg10[%c0_3, %c0_4], %2 {strides = array<i32>} : memref<20x64xbf16, #tpu.memory_space<vmem>>, vector<2x64xbf16>,
    %cst_5 = arith.constant 0.000000e+00 : bf16
    %4 = vector.broadcast %cst_5 : bf16 to vector<2x64xbf16>
    %c18 = arith.constant 18 : index
    %c0_6 = arith.constant 0 : index
    %5 = vector.load %arg10[%c18, %c0_6] : memref<20x64xbf16, #tpu.memory_space<vmem>>, vector<2x64xbf16>
    tpu.vector_store %arg10[%c18, %c0_6], %4 {strides = array<i32>} : memref<20x64xbf16, #tpu.memory_space<vmem>>, vector<2x64xbf16>,
    %cst_7 = arith.constant 0.000000e+00 : bf16
    %6 = vector.broadcast %cst_7 : bf16 to vector<2x256xbf16>
    %c0_8 = arith.constant 0 : index
    %c0_9 = arith.constant 0 : index
    %7 = vector.load %arg11[%c0_8, %c0_9] : memref<20x256xbf16, #tpu.memory_space<vmem>>, vector<2x256xbf16>
    tpu.vector_store %arg11[%c0_8, %c0_9], %6 {strides = array<i32>} : memref<20x256xbf16, #tpu.memory_space<vmem>>, vector<2x256xbf16>,
    %cst_10 = arith.constant 0.000000e+00 : bf16
    %8 = vector.broadcast %cst_10 : bf16 to vector<2x256xbf16>
    %c18_11 = arith.constant 18 : index
    %c0_12 = arith.constant 0 : index
    %9 = vector.load %arg11[%c18_11, %c0_12] : memref<20x256xbf16, #tpu.memory_space<vmem>>, vector<2x256xbf16>
    tpu.vector_store %arg11[%c18_11, %c0_12], %8 {strides = array<i32>} : memref<20x256xbf16, #tpu.memory_space<vmem>>, vector<2x256xbf16>,
    %c0_13 = arith.constant 0 : index
    %c0_14 = arith.constant 0 : index
    %c0_15 = arith.constant 0 : index
    %10 = vector.load %arg1[%c0_13, %c0_14, %c0_15] : memref<1x16x64xf32, #tpu.memory_space<vmem>>, vector<1x16x64xf32>
    %11 = vector.shape_cast %10 : vector<1x16x64xf32> to vector<16x64xf32>
    %12 = arith.truncf %11 : vector<16x64xf32> to vector<16x64xbf16>
    %c2 = arith.constant 2 : index
    %c0_16 = arith.constant 0 : index
    %13 = vector.load %arg10[%c2, %c0_16] : memref<20x64xbf16, #tpu.memory_space<vmem>>, vector<16x64xbf16>
    tpu.vector_store %arg10[%c2, %c0_16], %12 {strides = array<i32>} : memref<20x64xbf16, #tpu.memory_space<vmem>>, vector<16x64xbf16>,
    %c1 = arith.constant 1 : index
    %c0_17 = arith.constant 0 : index
    %14 = vector.load %arg10[%c1, %c0_17] : memref<20x64xbf16, #tpu.memory_space<vmem>>, vector<16x64xbf16>
    %c0_18 = arith.constant 0 : index
    %c0_19 = arith.constant 0 : index
    %c0_20 = arith.constant 0 : index
    %15 = vector.load %arg3[%c0_18, %c0_19, %c0_20] : memref<3x64x256xbf16, #tpu.memory_space<vmem>>, vector<1x64x256xbf16>
    %16 = vector.shape_cast %15 : vector<1x64x256xbf16> to vector<64x256xbf16>
    %cst_21 = arith.constant dense<0.000000e+00> : vector<16x256xf32>
    %17 = tpu.matmul %14, %16, %cst_21 {dimension_numbers = #tpu.dot_dimension_numbers<[1], [0], [0], [1], [0, 0, 1, 1], [], []>} : vector<16x64xbf16>, vector<64x256xbf16>, vector<16x256xf32> -> vector<16x256xf32>
    %c2_22 = arith.constant 2 : index
    %c0_23 = arith.constant 0 : index
    %18 = vector.load %arg10[%c2_22, %c0_23] : memref<20x64xbf16, #tpu.memory_space<vmem>>, vector<16x64xbf16>
    %c1_24 = arith.constant 1 : index
    %c0_25 = arith.constant 0 : index
    %c0_26 = arith.constant 0 : index
    %19 = vector.load %arg3[%c1_24, %c0_25, %c0_26] : memref<3x64x256xbf16, #tpu.memory_space<vmem>>, vector<1x64x256xbf16>
    %20 = vector.shape_cast %19 : vector<1x64x256xbf16> to vector<64x256xbf16>
    %cst_27 = arith.constant dense<0.000000e+00> : vector<16x256xf32>
    %21 = tpu.matmul %18, %20, %cst_27 {dimension_numbers = #tpu.dot_dimension_numbers<[1], [0], [0], [1], [0, 0, 1, 1], [], []>} : vector<16x64xbf16>, vector<64x256xbf16>, vector<16x256xf32> -> vector<16x256xf32>
    %22 = arith.addf %17, %21 : vector<16x256xf32>
    %c3 = arith.constant 3 : index
    %c0_28 = arith.constant 0 : index
    %23 = vector.load %arg10[%c3, %c0_28] : memref<20x64xbf16, #tpu.memory_space<vmem>>, vector<16x64xbf16>
    %c2_29 = arith.constant 2 : index
    %c0_30 = arith.constant 0 : index
    %c0_31 = arith.constant 0 : index
    %24 = vector.load %arg3[%c2_29, %c0_30, %c0_31] : memref<3x64x256xbf16, #tpu.memory_space<vmem>>, vector<1x64x256xbf16>
    %25 = vector.shape_cast %24 : vector<1x64x256xbf16> to vector<64x256xbf16>
    %cst_32 = arith.constant dense<0.000000e+00> : vector<16x256xf32>
    %26 = tpu.matmul %23, %25, %cst_32 {dimension_numbers = #tpu.dot_dimension_numbers<[1], [0], [0], [1], [0, 0, 1, 1], [], []>} : vector<16x64xbf16>, vector<64x256xbf16>, vector<16x256xf32> -> vector<16x256xf32>
    %27 = arith.addf %22, %26 : vector<16x256xf32>
    %28 = vector.extract_strided_slice %0 {offsets = [0, 0], sizes = [1, 256], strides = [1, 1]} : vector<8x256xf32> to vector<1x256xf32>
    %29 = vector.broadcast %28 : vector<1x256xf32> to vector<16x256xf32>
    %30 = arith.addf %27, %29 : vector<16x256xf32>
    %31 = vector.extract_strided_slice %0 {offsets = [1, 0], sizes = [1, 256], strides = [1, 1]} : vector<8x256xf32> to vector<1x256xf32>
    %32 = vector.extract_strided_slice %0 {offsets = [2, 0], sizes = [1, 256], strides = [1, 1]} : vector<8x256xf32> to vector<1x256xf32>
    %cst_33 = arith.constant dense<0.000000e+00> : vector<256xf32>
    %33 = vector.multi_reduction <add>, %30, %cst_33 [0] : vector<16x256xf32> to vector<256xf32>
    %34 = vector.shape_cast %33 : vector<256xf32> to vector<1x256xf32>
    %35 = arith.mulf %30, %30 : vector<16x256xf32>
    %cst_34 = arith.constant dense<0.000000e+00> : vector<256xf32>
    %36 = vector.multi_reduction <add>, %35, %cst_34 [0] : vector<16x256xf32> to vector<256xf32>
    %37 = vector.shape_cast %36 : vector<256xf32> to vector<1x256xf32>
    %38 = tpu.concatenate %34, %37 in 0 : vector<1x256xf32>, vector<1x256xf32> -> vector<2x256xf32>
    %39 = vector.extract_strided_slice %38 {offsets = [0, 0], sizes = [2, 128], strides = [1, 1]} : vector<2x256xf32> to vector<2x128xf32>
    %40 = vector.extract_strided_slice %38 {offsets = [0, 128], sizes = [2, 128], strides = [1, 1]} : vector<2x256xf32> to vector<2x128xf32>
    %41 = arith.addf %39, %40 : vector<2x128xf32>
    %42 = vector.extract_strided_slice %41 {offsets = [0, 0], sizes = [2, 64], strides = [1, 1]} : vector<2x128xf32> to vector<2x64xf32>
    %43 = vector.extract_strided_slice %41 {offsets = [0, 64], sizes = [2, 64], strides = [1, 1]} : vector<2x128xf32> to vector<2x64xf32>
    %44 = arith.addf %42, %43 : vector<2x64xf32>
    %45 = vector.extract_strided_slice %44 {offsets = [0, 0], sizes = [2, 32], strides = [1, 1]} : vector<2x64xf32> to vector<2x32xf32>
    %46 = vector.extract_strided_slice %44 {offsets = [0, 32], sizes = [2, 32], strides = [1, 1]} : vector<2x64xf32> to vector<2x32xf32>
    %47 = arith.addf %45, %46 : vector<2x32xf32>
    %48 = vector.extract_strided_slice %47 {offsets = [0, 0], sizes = [2, 16], strides = [1, 1]} : vector<2x32xf32> to vector<2x16xf32>
    %49 = vector.extract_strided_slice %47 {offsets = [0, 16], sizes = [2, 16], strides = [1, 1]} : vector<2x32xf32> to vector<2x16xf32>
    %50 = arith.addf %48, %49 : vector<2x16xf32>
    %cst_35 = arith.constant dense<0.000000e+00> : vector<2x256xf32>
    %51 = tpu.matmul %50, %1, %cst_35 {dimension_numbers = #tpu.dot_dimension_numbers<[1], [0], [0], [1], [0, 0, 1, 1], [], []>, precision = #tpu.contract_precision<fp32>} : vector<2x16xf32>, vector<16x256xf32>, vector<2x256xf32> -> vector<2x256xf32>
    %52 = vector.extract_strided_slice %51 {offsets = [0, 0], sizes = [1, 256], strides = [1, 1]} : vector<2x256xf32> to vector<1x256xf32>
    %cst_36 = arith.constant 0.001953125 : f32
    %53 = vector.broadcast %cst_36 : f32 to vector<1x256xf32>
    %54 = arith.mulf %52, %53 : vector<1x256xf32>
    %55 = vector.extract_strided_slice %51 {offsets = [1, 0], sizes = [1, 256], strides = [1, 1]} : vector<2x256xf32> to vector<1x256xf32>
    %cst_37 = arith.constant 0.001953125 : f32
    %56 = vector.broadcast %cst_37 : f32 to vector<1x256xf32>
    %57 = arith.mulf %55, %56 : vector<1x256xf32>
    %58 = arith.mulf %54, %54 : vector<1x256xf32>
    %59 = arith.subf %57, %58 : vector<1x256xf32>
    %cst_38 = arith.constant 0.000000e+00 : f32
    %60 = vector.broadcast %cst_38 : f32 to vector<1x256xf32>
    %61 = arith.maximumf %59, %60 : vector<1x256xf32>
    %cst_39 = arith.constant 9.99999974E-6 : f32
    %62 = vector.broadcast %cst_39 : f32 to vector<1x256xf32>
    %63 = arith.addf %61, %62 : vector<1x256xf32>
    %64 = math.rsqrt %63 : vector<1x256xf32>
    %65 = vector.broadcast %54 : vector<1x256xf32> to vector<16x256xf32>
    %66 = arith.subf %30, %65 : vector<16x256xf32>
    %67 = arith.mulf %64, %31 : vector<1x256xf32>
    %68 = vector.broadcast %67 : vector<1x256xf32> to vector<16x256xf32>
    %69 = arith.mulf %66, %68 : vector<16x256xf32>
    %70 = vector.broadcast %32 : vector<1x256xf32> to vector<16x256xf32>
    %71 = arith.addf %69, %70 : vector<16x256xf32>
    %72 = arith.negf %71 : vector<16x256xf32>
    %73 = math.exp %72 : vector<16x256xf32>
    %cst_40 = arith.constant 1.000000e+00 : f32
    %74 = vector.broadcast %cst_40 : f32 to vector<16x256xf32>
    %75 = arith.addf %74, %73 : vector<16x256xf32>
    %76 = arith.divf %74, %75 : vector<16x256xf32>
    %77 = arith.mulf %71, %76 : vector<16x256xf32>
    %c0_41 = arith.constant 0 : index
    %c0_42 = arith.constant 0 : index
    %c0_43 = arith.constant 0 : index
    %78 = vector.load %arg2[%c0_41, %c0_42, %c0_43] : memref<1x1x32xf32, #tpu.memory_space<vmem>>, vector<1x1x32xf32>
    %79 = vector.shape_cast %78 : vector<1x1x32xf32> to vector<1x32xf32>
    %80 = arith.negf %79 : vector<1x32xf32>
    %81 = math.exp %80 : vector<1x32xf32>
    %cst_44 = arith.constant 1.000000e+00 : f32
    %82 = vector.broadcast %cst_44 : f32 to vector<1x32xf32>
    %83 = arith.addf %82, %81 : vector<1x32xf32>
    %84 = arith.divf %82, %83 : vector<1x32xf32>
    %85 = arith.mulf %79, %84 : vector<1x32xf32>
    %c0_45 = arith.constant 0 : index
    %c0_46 = arith.constant 0 : index
    %86 = vector.load %arg5[%c0_45, %c0_46] : memref<32x256xf32, #tpu.memory_space<vmem>>, vector<32x256xf32>
    %cst_47 = arith.constant dense<0.000000e+00> : vector<1x256xf32>
    %87 = tpu.matmul %85, %86, %cst_47 {dimension_numbers = #tpu.dot_dimension_numbers<[1], [0], [0], [1], [0, 0, 1, 1], [], []>, precision = #tpu.contract_precision<fp32>} : vector<1x32xf32>, vector<32x256xf32>, vector<1x256xf32> -> vector<1x256xf32>
    %88 = vector.extract_strided_slice %0 {offsets = [3, 0], sizes = [1, 256], strides = [1, 1]} : vector<8x256xf32> to vector<1x256xf32>
    %89 = arith.addf %87, %88 : vector<1x256xf32>
    %90 = vector.broadcast %89 : vector<1x256xf32> to vector<16x256xf32>
    %91 = arith.addf %77, %90 : vector<16x256xf32>
    %92 = arith.truncf %91 : vector<16x256xf32> to vector<16x256xbf16>
    %c2_48 = arith.constant 2 : index
    %c0_49 = arith.constant 0 : index
    %93 = vector.load %arg11[%c2_48, %c0_49] : memref<20x256xbf16, #tpu.memory_space<vmem>>, vector<16x256xbf16>
    tpu.vector_store %arg11[%c2_48, %c0_49], %92 {strides = array<i32>} : memref<20x256xbf16, #tpu.memory_space<vmem>>, vector<16x256xbf16>,
    %c1_50 = arith.constant 1 : index
    %c0_51 = arith.constant 0 : index
    %94 = vector.load %arg11[%c1_50, %c0_51] : memref<20x256xbf16, #tpu.memory_space<vmem>>, vector<16x256xbf16>
    %c0_52 = arith.constant 0 : index
    %c0_53 = arith.constant 0 : index
    %c0_54 = arith.constant 0 : index
    %95 = vector.load %arg4[%c0_52, %c0_53, %c0_54] : memref<3x256x256xbf16, #tpu.memory_space<vmem>>, vector<1x256x256xbf16>
    %96 = vector.shape_cast %95 : vector<1x256x256xbf16> to vector<256x256xbf16>
    %cst_55 = arith.constant dense<0.000000e+00> : vector<16x256xf32>
    %97 = tpu.matmul %94, %96, %cst_55 {dimension_numbers = #tpu.dot_dimension_numbers<[1], [0], [0], [1], [0, 0, 1, 1], [], []>} : vector<16x256xbf16>, vector<256x256xbf16>, vector<16x256xf32> -> vector<16x256xf32>
    %c2_56 = arith.constant 2 : index
    %c0_57 = arith.constant 0 : index
    %98 = vector.load %arg11[%c2_56, %c0_57] : memref<20x256xbf16, #tpu.memory_space<vmem>>, vector<16x256xbf16>
    %c1_58 = arith.constant 1 : index
    %c0_59 = arith.constant 0 : index
    %c0_60 = arith.constant 0 : index
    %99 = vector.load %arg4[%c1_58, %c0_59, %c0_60] : memref<3x256x256xbf16, #tpu.memory_space<vmem>>, vector<1x256x256xbf16>
    %100 = vector.shape_cast %99 : vector<1x256x256xbf16> to vector<256x256xbf16>
    %cst_61 = arith.constant dense<0.000000e+00> : vector<16x256xf32>
    %101 = tpu.matmul %98, %100, %cst_61 {dimension_numbers = #tpu.dot_dimension_numbers<[1], [0], [0], [1], [0, 0, 1, 1], [], []>} : vector<16x256xbf16>, vector<256x256xbf16>, vector<16x256xf32> -> vector<16x256xf32>
    %102 = arith.addf %97, %101 : vector<16x256xf32>
    %c3_62 = arith.constant 3 : index
    %c0_63 = arith.constant 0 : index
    %103 = vector.load %arg11[%c3_62, %c0_63] : memref<20x256xbf16, #tpu.memory_space<vmem>>, vector<16x256xbf16>
    %c2_64 = arith.constant 2 : index
    %c0_65 = arith.constant 0 : index
    %c0_66 = arith.constant 0 : index
    %104 = vector.load %arg4[%c2_64, %c0_65, %c0_66] : memref<3x256x256xbf16, #tpu.memory_space<vmem>>, vector<1x256x256xbf16>
    %105 = vector.shape_cast %104 : vector<1x256x256xbf16> to vector<256x256xbf16>
    %cst_67 = arith.constant dense<0.000000e+00> : vector<16x256xf32>
    %106 = tpu.matmul %103, %105, %cst_67 {dimension_numbers = #tpu.dot_dimension_numbers<[1], [0], [0], [1], [0, 0, 1, 1], [], []>} : vector<16x256xbf16>, vector<256x256xbf16>, vector<16x256xf32> -> vector<16x256xf32>
    %107 = arith.addf %102, %106 : vector<16x256xf32>
    %108 = vector.extract_strided_slice %0 {offsets = [4, 0], sizes = [1, 256], strides = [1, 1]} : vector<8x256xf32> to vector<1x256xf32>
    %109 = vector.broadcast %108 : vector<1x256xf32> to vector<16x256xf32>
    %110 = arith.addf %107, %109 : vector<16x256xf32>
    %111 = vector.extract_strided_slice %0 {offsets = [5, 0], sizes = [1, 256], strides = [1, 1]} : vector<8x256xf32> to vector<1x256xf32>
    %112 = vector.extract_strided_slice %0 {offsets = [6, 0], sizes = [1, 256], strides = [1, 1]} : vector<8x256xf32> to vector<1x256xf32>
    %cst_68 = arith.constant dense<0.000000e+00> : vector<256xf32>
    %113 = vector.multi_reduction <add>, %110, %cst_68 [0] : vector<16x256xf32> to vector<256xf32>
    %114 = vector.shape_cast %113 : vector<256xf32> to vector<1x256xf32>
    %115 = arith.mulf %110, %110 : vector<16x256xf32>
    %cst_69 = arith.constant dense<0.000000e+00> : vector<256xf32>
    %116 = vector.multi_reduction <add>, %115, %cst_69 [0] : vector<16x256xf32> to vector<256xf32>
    %117 = vector.shape_cast %116 : vector<256xf32> to vector<1x256xf32>
    %118 = tpu.concatenate %114, %117 in 0 : vector<1x256xf32>, vector<1x256xf32> -> vector<2x256xf32>
    %119 = vector.extract_strided_slice %118 {offsets = [0, 0], sizes = [2, 128], strides = [1, 1]} : vector<2x256xf32> to vector<2x128xf32>
    %120 = vector.extract_strided_slice %118 {offsets = [0, 128], sizes = [2, 128], strides = [1, 1]} : vector<2x256xf32> to vector<2x128xf32>
    %121 = arith.addf %119, %120 : vector<2x128xf32>
    %122 = vector.extract_strided_slice %121 {offsets = [0, 0], sizes = [2, 64], strides = [1, 1]} : vector<2x128xf32> to vector<2x64xf32>
    %123 = vector.extract_strided_slice %121 {offsets = [0, 64], sizes = [2, 64], strides = [1, 1]} : vector<2x128xf32> to vector<2x64xf32>
    %124 = arith.addf %122, %123 : vector<2x64xf32>
    %125 = vector.extract_strided_slice %124 {offsets = [0, 0], sizes = [2, 32], strides = [1, 1]} : vector<2x64xf32> to vector<2x32xf32>
    %126 = vector.extract_strided_slice %124 {offsets = [0, 32], sizes = [2, 32], strides = [1, 1]} : vector<2x64xf32> to vector<2x32xf32>
    %127 = arith.addf %125, %126 : vector<2x32xf32>
    %128 = vector.extract_strided_slice %127 {offsets = [0, 0], sizes = [2, 16], strides = [1, 1]} : vector<2x32xf32> to vector<2x16xf32>
    %129 = vector.extract_strided_slice %127 {offsets = [0, 16], sizes = [2, 16], strides = [1, 1]} : vector<2x32xf32> to vector<2x16xf32>
    %130 = arith.addf %128, %129 : vector<2x16xf32>
    %cst_70 = arith.constant dense<0.000000e+00> : vector<2x256xf32>
    %131 = tpu.matmul %130, %1, %cst_70 {dimension_numbers = #tpu.dot_dimension_numbers<[1], [0], [0], [1], [0, 0, 1, 1], [], []>, precision = #tpu.contract_precision<fp32>} : vector<2x16xf32>, vector<16x256xf32>, vector<2x256xf32> -> vector<2x256xf32>
    %132 = vector.extract_strided_slice %131 {offsets = [0, 0], sizes = [1, 256], strides = [1, 1]} : vector<2x256xf32> to vector<1x256xf32>
    %cst_71 = arith.constant 0.001953125 : f32
    %133 = vector.broadcast %cst_71 : f32 to vector<1x256xf32>
    %134 = arith.mulf %132, %133 : vector<1x256xf32>
    %135 = vector.extract_strided_slice %131 {offsets = [1, 0], sizes = [1, 256], strides = [1, 1]} : vector<2x256xf32> to vector<1x256xf32>
    %cst_72 = arith.constant 0.001953125 : f32
    %136 = vector.broadcast %cst_72 : f32 to vector<1x256xf32>
    %137 = arith.mulf %135, %136 : vector<1x256xf32>
    %138 = arith.mulf %134, %134 : vector<1x256xf32>
    %139 = arith.subf %137, %138 : vector<1x256xf32>
    %cst_73 = arith.constant 0.000000e+00 : f32
    %140 = vector.broadcast %cst_73 : f32 to vector<1x256xf32>
    %141 = arith.maximumf %139, %140 : vector<1x256xf32>
    %cst_74 = arith.constant 9.99999974E-6 : f32
    %142 = vector.broadcast %cst_74 : f32 to vector<1x256xf32>
    %143 = arith.addf %141, %142 : vector<1x256xf32>
    %144 = math.rsqrt %143 : vector<1x256xf32>
    %145 = vector.broadcast %134 : vector<1x256xf32> to vector<16x256xf32>
    %146 = arith.subf %110, %145 : vector<16x256xf32>
    %147 = arith.mulf %144, %111 : vector<1x256xf32>
    %148 = vector.broadcast %147 : vector<1x256xf32> to vector<16x256xf32>
    %149 = arith.mulf %146, %148 : vector<16x256xf32>
    %150 = vector.broadcast %112 : vector<1x256xf32> to vector<16x256xf32>
    %151 = arith.addf %149, %150 : vector<16x256xf32>
    %152 = arith.negf %151 : vector<16x256xf32>
    %153 = math.exp %152 : vector<16x256xf32>
    %cst_75 = arith.constant 1.000000e+00 : f32
    %154 = vector.broadcast %cst_75 : f32 to vector<16x256xf32>
    %155 = arith.addf %154, %153 : vector<16x256xf32>
    %156 = arith.divf %154, %155 : vector<16x256xf32>
    %157 = arith.mulf %151, %156 : vector<16x256xf32>
    %c0_76 = arith.constant 0 : index
    %c0_77 = arith.constant 0 : index
    %158 = vector.load %arg6[%c0_76, %c0_77] : memref<64x256xf32, #tpu.memory_space<vmem>>, vector<64x256xf32>
    %cst_78 = arith.constant dense<0.000000e+00> : vector<16x256xf32>
    %159 = tpu.matmul %11, %158, %cst_78 {dimension_numbers = #tpu.dot_dimension_numbers<[1], [0], [0], [1], [0, 0, 1, 1], [], []>, precision = #tpu.contract_precision<fp32>} : vector<16x64xf32>, vector<64x256xf32>, vector<16x256xf32> -> vector<16x256xf32>
    %160 = vector.extract_strided_slice %0 {offsets = [7, 0], sizes = [1, 256], strides = [1, 1]} : vector<8x256xf32> to vector<1x256xf32>
    %161 = vector.broadcast %160 : vector<1x256xf32> to vector<16x256xf32>
    %162 = arith.addf %159, %161 : vector<16x256xf32>
    %163 = arith.addf %157, %162 : vector<16x256xf32>
    %c0_79 = arith.constant 0 : index
    %c0_80 = arith.constant 0 : index
    %c0_81 = arith.constant 0 : index
    %164 = vector.load %arg9[%c0_79, %c0_80, %c0_81] : memref<1x16x256xf32, #tpu.memory_space<vmem>>, vector<1x16x256xf32>
    %165 = vector.shape_cast %164 : vector<1x16x256xf32> to vector<16x256xf32>
    %166 = vector.shape_cast %163 : vector<16x256xf32> to vector<1x16x256xf32>
    tpu.vector_store %arg9[%c0_79, %c0_80, %c0_81], %166 {strides = array<i32>} : memref<1x16x256xf32, #tpu.memory_space<vmem>>, vector<1x16x256xf32>,
    return
  }
  func.func @transform_0(%arg0: i32) -> (i32, i32, i32) {
    %c0_i32 = arith.constant 0 : i32
    %c0_i32_0 = arith.constant 0 : i32
    %c0_i32_1 = arith.constant 0 : i32
    return %arg0, %c0_i32, %c0_i32_0 : i32, i32, i32
  }
  func.func @transform_1(%arg0: i32) -> (i32, i32, i32) {
    %c0_i32 = arith.constant 0 : i32
    %c0_i32_0 = arith.constant 0 : i32
    %c0_i32_1 = arith.constant 0 : i32
    return %arg0, %c0_i32, %c0_i32_0 : i32, i32, i32
  }
  func.func @transform_2(%arg0: i32) -> (i32, i32, i32) {
    %c0_i32 = arith.constant 0 : i32
    %c0_i32_0 = arith.constant 0 : i32
    %c0_i32_1 = arith.constant 0 : i32
    %c0_i32_2 = arith.constant 0 : i32
    return %c0_i32, %c0_i32_0, %c0_i32_1 : i32, i32, i32
  }
  func.func @transform_3(%arg0: i32) -> (i32, i32, i32) {
    %c0_i32 = arith.constant 0 : i32
    %c0_i32_0 = arith.constant 0 : i32
    %c0_i32_1 = arith.constant 0 : i32
    %c0_i32_2 = arith.constant 0 : i32
    return %c0_i32, %c0_i32_0, %c0_i32_1 : i32, i32, i32
  }
  func.func @transform_4(%arg0: i32) -> (i32, i32) {
    %c0_i32 = arith.constant 0 : i32
    %c0_i32_0 = arith.constant 0 : i32
    %c0_i32_1 = arith.constant 0 : i32
    return %c0_i32, %c0_i32_0 : i32, i32
  }
  func.func @transform_5(%arg0: i32) -> (i32, i32) {
    %c0_i32 = arith.constant 0 : i32
    %c0_i32_0 = arith.constant 0 : i32
    %c0_i32_1 = arith.constant 0 : i32
    return %c0_i32, %c0_i32_0 : i32, i32
  }
  func.func @transform_6(%arg0: i32) -> (i32, i32) {
    %c0_i32 = arith.constant 0 : i32
    %c0_i32_0 = arith.constant 0 : i32
    %c0_i32_1 = arith.constant 0 : i32
    return %c0_i32, %c0_i32_0 : i32, i32
  }
  func.func @transform_7(%arg0: i32) -> (i32, i32) {
    %c0_i32 = arith.constant 0 : i32
    %c0_i32_0 = arith.constant 0 : i32
    %c0_i32_1 = arith.constant 0 : i32
    return %c0_i32, %c0_i32_0 : i32, i32
  }
  func.func @transform_8(%arg0: i32) -> (i32, i32, i32) {
    %c0_i32 = arith.constant 0 : i32
    %c0_i32_0 = arith.constant 0 : i32
    %c0_i32_1 = arith.constant 0 : i32
    return %arg0, %c0_i32, %c0_i32_0 : i32, i32, i32
  }
}

</mosaic_0001>

<bundles_post_ra>
// kernel: tpu_custom_call.1
= control target key start
LH: loop header
LB: loop body
LE: loop exit
PB: predicated region body
PF: predicated region fallthrough
CT: control target
= control target key end

     0   :  { %s6367_s0 = inlined_call_operand.hbm [shape: f32[2,16,64], index: 0, kind: input, shape index: {}]   ;;  %s6368_s1 = inlined_call_operand.hbm [shape: f32[2,1,32], index: 1, kind: input, shape index: {}]   ;;  %s6369_s2 = inlined_call_operand.hbm [shape: bf16[3,64,256], index: 2, kind: input, shape index: {}]   ;;  %s6370_s3 = inlined_call_operand.hbm [shape: bf16[3,256,256], index: 3, kind: input, shape index: {}]   ;;  %s6371_s4 = inlined_call_operand.hbm [shape: f32[32,256], index: 4, kind: input, shape index: {}]   ;;  %s6372_s5 = inlined_call_operand.hbm [shape: f32[64,256], index: 5, kind: input, shape index: {}]   ;;  %s6373_s6 = inlined_call_operand.hbm [shape: f32[8,256], index: 6, kind: input, shape index: {}]   ;;  %s6374_s7 = inlined_call_operand.hbm [shape: f32[16,256], index: 7, kind: input, shape index: {}]   ;;  %s6375_s8 = inlined_call_operand.hbm [shape: f32[2,16,256], index: 8, kind: output, shape index: {}]  }
   0x1   :  { %6392 = sst [smem:[#allocation32_spill]] %s6367_s0 }
   0x2   :  { %6393 = sst [smem:[#allocation33_spill]] %s6369_s2 }
   0x3   :  { %6394 = sst [smem:[#allocation34_spill]] %s6370_s3 }
   0x4   :  { %6395 = sst [smem:[#allocation35_spill]] %s6371_s4 }
   0x5   :  { %6396 = sst [smem:[#allocation36_spill]] %s6372_s5 }
   0x6   :  { %6397 = sst [smem:[#allocation37_spill]] %s6373_s6 }
   0x7   :  { %6398 = sst [smem:[#allocation38_spill]] %s6374_s7 }
   0x8   :  { %13 = vsyncpa [#allocation5], 0 }
   0x9   :  { %15 = vsyncpa [#allocation5 + $0x1], 0 }
   0xa   :  { %16 = vsyncpa [#allocation8], 0 }
   0xb   :  { %18 = vsyncpa [#allocation8 + $0x1], 0 }
   0xc   :  { %19 = vsyncpa [#allocation11], 0 }
   0xd   :  { %20 = vsyncpa [#allocation14], 0 }
   0xe   :  { %21 = vsyncpa [#allocation17], 0 }
   0xf   :  { %22 = vsyncpa [#allocation6], 0 }
  0x10   :  { %24 = vsyncpa [#allocation6 + $0x1], 0  ;;  %s5321_s27 = smov 0   ;;  %s5323_s28 = smov 0  }
  0x11   :  { %s5325_s29 = smov 0   ;;  %s5327_s30 = smov 0  }
  0x12 LB: > { %s5256_s9 = smov [#allocation9]   ;;  %s5342_s11 = sadd.s32 4294967295, %s5254_s30   ;;  %s5254_s30 = sphi %s5327_s30, %s6449_s30   ;;  %s5250_s29 = sphi %s5325_s29, %s6448_s29   ;;  %s5246_s28 = sphi %s5323_s28, %s6447_s28   ;;  %s5242_s27 = sphi %s5321_s27, %s6446_s27  }
  0x13   : > { %s251_s10 = sshll.u32 %s5256_s9, 4  ;;  %p4419_p0 = scmp.ge.s32.totalorder %s5254_s30, 1  ;;  %s252_s10 = int_to_ptr.vmem [resolvable:$true] %s251_s10 }
  0x14   : > { %p6378_p1 = scmp.eq.s32.totalorder %s5342_s11, 0  ;;  %p239_p2 = scmp.lt.s32.totalorder %s5254_s30, 3 }
  0x15   : > { %s5257_s13 = smov [#allocation10]   ;;  %s5258_s16 = smov [#allocation13]  }
  0x16   : > { %p5347_p3 = pnand %p4419_p0, %p239_p2  ;;  %s264_s14 = sshll.u32 %s5257_s13, 4  ;;  %s265_s14 = int_to_ptr.vmem [resolvable:$true] %s264_s14 }
  0x17   : > { %s290_s17 = sshll.u32 %s5258_s16, 4  ;;  %s4969_s19 = scalar_lea.vmem %s252_s10, 3072  ;;  %s291_s17 = int_to_ptr.vmem [resolvable:$true] %s290_s17 }
  0x18   : > { %s6399_s12 = scalar_select %p5347_p3, 1, 0 }
  0x19   : > { %p4629_p5 = pneg %p5347_p3  ;;  %p4970_p8 = scmp.ne.s32.totalorder %s252_s10, %s4969_s19 }
  0x1a   : > { %p4977_p11 = scmp.lt.s32.totalorder %s252_s10, %s252_s10  ;;  %p4978_p12 = scmp.lt.s32.totalorder %s4969_s19, %s4969_s19 }
  0x1b   : > { %p5356_p6 = pnand %p4629_p5, %p6378_p1 }
  0x1c   : > { %p4979_p13 = por %p4978_p12, %p4977_p11 }
  0x1d   : > { %p5362_p7 = pneg %p5356_p6 }
  0x1f   : > { %p4972_p9 = pnand %p4970_p8, %p5362_p7 }
  0x21   : > { %p4973_p10 = pneg %p4972_p9 }
  0x23   : > { %p4980_p0 = pnand %p4979_p13, %p4973_p10 }
  0x25   : > { %4983 = shalt.err (!%p4980_p0)
}
  0x26   : > { %s6376_s20 = smov 128   ;;  %s6377_s21 = smov 8  }
  0x27   : > { %s6402_s2 = sld [smem:[#allocation33_spill]]  ;;  %s4995_s24 = scalar_lea.vmem %s265_s14, 12288 }
  0x28   : > { %p4996_p2 = scmp.ne.s32.totalorder %s265_s14, %s4995_s24  ;;  %p5003_p9 = scmp.lt.s32.totalorder %s265_s14, %s265_s14 }
  0x29   : > { %p5004_p10 = scmp.lt.s32.totalorder %s4995_s24, %s4995_s24 }
  0x2a   : > { %p4998_p5 = pnand %p4996_p2, %p5362_p7 }
  0x2b   : > { %p5005_p11 = por %p5004_p10, %p5003_p9 }
  0x2c   : > { %p4999_p8 = pneg %p4998_p5 }
  0x2d   : > { %4632 = dma.hbm_to_vmem [thread:$0]  (!%p5356_p6), %s6402_s2, 3072, %s252_s10, [#allocation8], %s6376_s20, %s6376_s20, %s6377_s21  }
  0x2e   : > { %p5006_p12 = pnand %p5005_p11, %p4999_p8 }
  0x30   : > { %5009 = shalt.err (!%p5006_p12)
}
  0x31   : > { %s6403_s3 = sld [smem:[#allocation34_spill]]  ;;  %s5021_s9 = scalar_lea.vmem %s291_s17, 2048 }
  0x32   : > { %p5022_p13 = scmp.ne.s32.totalorder %s291_s17, %s5021_s9  ;;  %p5029_p5 = scmp.lt.s32.totalorder %s291_s17, %s291_s17 }
  0x33   : > { %p5030_p9 = scmp.lt.s32.totalorder %s5021_s9, %s5021_s9 }
  0x34   : > { %p5024_p0 = pnand %p5022_p13, %p5362_p7 }
  0x35   : > { %p5031_p8 = por %p5030_p9, %p5029_p5 }
  0x36   : > { %p5025_p2 = pneg %p5024_p0 }
  0x37   : > { %4635 = dma.hbm_to_vmem [thread:$0]  (!%p5356_p6), %s6403_s3, 12288, %s265_s14, [#allocation11], %s6376_s20, %s6376_s20, %s6377_s21  }
  0x38   : > { %p5032_p10 = pnand %p5031_p8, %p5025_p2 }
  0x3a   : > { %5035 = shalt.err (!%p5032_p10)
}
  0x3b   : > { %s5261_s10 = smov 256   ;;  %s5262_s13 = smov 16  }
  0x3c   : > { %s6404_s5 = sld [smem:[#allocation36_spill]]  ;;  %s5263_s19 = smov [#allocation12]  }
  0x3d   : > { %s277_s22 = sshll.u32 %s5263_s19, 4  ;;  %s5264_s23 = smov [#allocation15]   ;;  %s278_s22 = int_to_ptr.vmem [resolvable:$true] %s277_s22 }
  0x3e   : > { %s304_s24 = sshll.u32 %s5264_s23, 4  ;;  %s5047_s25 = scalar_lea.vmem %s278_s22, 1024  ;;  %s305_s24 = int_to_ptr.vmem [resolvable:$true] %s304_s24 }
  0x3f   : > { %p5048_p11 = scmp.ne.s32.totalorder %s278_s22, %s5047_s25  ;;  %p5055_p0 = scmp.lt.s32.totalorder %s278_s22, %s278_s22 }
  0x40   : > { %p5056_p2 = scmp.lt.s32.totalorder %s5047_s25, %s5047_s25 }
  0x41   : > { %p5050_p12 = pnand %p5048_p11, %p5362_p7 }
  0x42   : > { %4641 = dma.hbm_to_vmem [thread:$0]  (!%p5356_p6), %s6404_s5, 2048, %s291_s17, [#allocation14], %s5261_s10, %s5261_s10, %s5262_s13  }
  0x43   : > { %p5051_p13 = pneg %p5050_p12  ;;  %p5057_p5 = por %p5056_p2, %p5055_p0 }
  0x45   : > { %p5058_p9 = pnand %p5057_p5, %p5051_p13 }
  0x47   : > { %5061 = shalt.err (!%p5058_p9)
}
  0x48   : > { %s6405_s4 = sld [smem:[#allocation35_spill]]  ;;  %s5073_s9 = scalar_lea.vmem %s305_s24, 256 }
  0x49   : > { %p5074_p8 = scmp.ne.s32.totalorder %s305_s24, %s5073_s9  ;;  %p5081_p12 = scmp.lt.s32.totalorder %s305_s24, %s305_s24 }
  0x4a   : > { %p5082_p0 = scmp.lt.s32.totalorder %s5073_s9, %s5073_s9 }
  0x4b   : > { %p5076_p10 = pnand %p5074_p8, %p5362_p7 }
  0x4c   : > { %p5083_p13 = por %p5082_p0, %p5081_p12 }
  0x4d   : > { %p5077_p11 = pneg %p5076_p10 }
  0x4e   : > { %4638 = dma.hbm_to_vmem [thread:$0]  (!%p5356_p6), %s6405_s4, 1024, %s278_s22, [#allocation11], %s5261_s10, %s5261_s10, %s5262_s13  }
  0x4f   : > { %p5084_p2 = pnand %p5083_p13, %p5077_p11 }
  0x51   : > { %5087 = shalt.err (!%p5084_p2)
}
  0x52   : > { %s6406_s6 = sld [smem:[#allocation37_spill]]  ;;  %s5265_s19 = smov [#allocation16]  }
  0x53   : > { %s314_s22 = sshll.u32 %s5265_s19, 4  ;;  %s315_s22 = int_to_ptr.vmem [resolvable:$true] %s314_s22 }
  0x54   : > { %s5099_s23 = scalar_lea.vmem %s315_s22, 512  ;;  %p5107_p10 = scmp.lt.s32.totalorder %s315_s22, %s315_s22 }
  0x55   : > { %p5100_p5 = scmp.ne.s32.totalorder %s315_s22, %s5099_s23  ;;  %p5108_p4 = scmp.lt.s32.totalorder %s5099_s23, %s5099_s23 }
  0x57   : > { %p5102_p9 = pnand %p5100_p5, %p5362_p7  ;;  %p5109_p12 = por %p5108_p4, %p5107_p10 }
  0x58   : > { %4644 = dma.hbm_to_vmem [thread:$0]  (!%p5356_p6), %s6406_s6, 256, %s305_s24, [#allocation14]  }
  0x59   : > { %p5103_p8 = pneg %p5102_p9 }
  0x5b   : > { %p5110_p11 = pnand %p5109_p12, %p5103_p8 }
  0x5d   : > { %5113 = shalt.err (!%p5110_p11)
}
  0x5e   : > { %s6407_s7 = sld [smem:[#allocation38_spill]]  ;;  %s4418_s15 = sadd.s32 4294967294, %s5254_s30  }
  0x5f   : > { %s5425_s18 = sadd.s32 1, %s5254_s30   ;;  %s37_s26 = sadd.s32 1, %s5250_s29 }
  0x60   : > { %s34_s17 = ssub.s32 %s5254_s30, %s5425_s18  ;;  %p44_p7 = scmp.ne.s32.totalorder %s5250_s29, %s5246_s28 }
  0x61   : > { %p35_p4 = scmp.eq.s32.totalorder %s34_s17, 0  ;;  %p45_p0 = scmp.eq.s32.totalorder %s5254_s30, 0 }
  0x62   : > { %p50_p13 = scmp.ne.s32.totalorder %s5246_s28, %s5242_s27  ;;  %p226_p5 = scmp.eq.s32.totalorder %s5342_s11, 1 }
  0x63   : > { %s5436_s9 = scalar_select %p35_p4, %s5250_s29, %s37_s26  }
  0x64   : > { %4647 = dma.hbm_to_vmem [thread:$0]  (!%p5356_p6), %s6407_s7, 512, %s315_s22, [#allocation17], %s5261_s10, %s5261_s10, %s5262_s13  }
  0x65   : > { %p5438_p2 = por %p45_p0, %p44_p7  ;;  %p5444_p6 = por %p6378_p1, %p50_p13 }
  0x66   : > { %p232_p9 = scmp.eq.s32.totalorder %s4418_s15, 1  ;;  %p4665_p8 = scmp.lt.s32.totalorder %s5254_s30, 2 }
  0x67   : > { %s6409_s10 = scalar_select %p5444_p6, 1, 0 }
  0x68   : > { %s5451_s13 = sand.u32 1, %s5250_s29   ;;  %p5453_p10 = por %p226_p5, %p44_p7 }
  0x69   : > { %p5457_p12 = por %p232_p9, %p50_p13  ;;  %s4427_s22 = sshll.u32 %s5451_s13, 4 }
  0x6a   : > { %s6410_s16 = scalar_select %p5453_p10, 1, 0 }
  0x6b   : > { %s6411_s19 = scalar_select %p5457_p12, 1, 0 }
  0x6c   : > { %s4593_s23 = sshll.u32 %s5254_s30, 8  ;;  %s6412_s0 = sld [smem:[#allocation32_spill]] }
  0x6d   : > { %s332_s15 = scalar_lea.vmem [#allocation4], %s4427_s22  ;;  %p5472_p11 = pnand %p4665_p8, %p5438_p2 }
  0x6e   : > { %s339_s26 = sshll.u32 %s332_s15, 4  ;;  %s329_s2 = scalar_lea.sflag [#allocation5], %s5451_s13  ;;  %s5468_s26 = int_to_ptr.vmem [resolvable:$true] %s339_s26 }
  0x6f   : > { %p5116_p7 = pneg %p5472_p11 }
  0x72   : > { %s5466_s17 = scalar_lea.hbm %s6412_s0, %s4593_s23  ;;  %s5119_s14 = scalar_lea.hbm %s6412_s0, 512 }
  0x73   : > { %s5114_s3 = scalar_lea.hbm %s5466_s17, 256  ;;  %p5120_p2 = scmp.lt.s32.totalorder %s5466_s17, %s6412_s0 }
  0x74   : > { %p5115_p4 = scmp.ne.s32.totalorder %s5466_s17, %s5114_s3  ;;  %p5121_p5 = scmp.lt.s32.totalorder %s5119_s14, %s5114_s3 }
  0x76   : > { %p5117_p0 = pnand %p5116_p7, %p5115_p4  ;;  %p5122_p9 = por %p5121_p5, %p5120_p2 }
  0x78   : > { %p5118_p13 = pneg %p5117_p0 }
  0x7a   : > { %p5123_p8 = pnand %p5122_p9, %p5118_p13 }
  0x7c   : > { %5126 = shalt.err (!%p5123_p8)
}
  0x7d   : > { %s5127_s15 = scalar_lea.vmem %s5468_s26, 256  ;;  %s5266_s22 = smov [#allocation4]  }
  0x7e   : > { %p5128_p1 = scmp.ne.s32.totalorder %s5468_s26, %s5127_s15  ;;  %s5132_s23 = sshll.u32 %s5266_s22, 4  ;;  %s5133_s23 = int_to_ptr.vmem [resolvable:$false] %s5132_s23 }
  0x7f   : > { %s5134_s21 = scalar_lea.vmem %s5133_s23, 512  ;;  %p5135_p12 = scmp.lt.s32.totalorder %s5468_s26, %s5133_s23 }
  0x80   : > { %p5130_p4 = pnand %p5128_p1, %p5116_p7  ;;  %p5136_p10 = scmp.lt.s32.totalorder %s5134_s21, %s5127_s15 }
  0x82   : > { %p5131_p0 = pneg %p5130_p4  ;;  %p5137_p6 = por %p5136_p10, %p5135_p12 }
  0x84   : > { %p5138_p2 = pnand %p5137_p6, %p5131_p0 }
  0x86   : > { %5141 = shalt.err (!%p5138_p2)
}
  0x87   : > { %s6414_s3 = smov 8   ;;  %s6415_s14 = smov 128  }
  0x88   : > { %4651 = dma.hbm_to_vmem [thread:$0]  (!%p5472_p11), %s5466_s17, 256, %s5468_s26, %s329_s2, %s6415_s14, %s6415_s14, %s6414_s3  }
  0x89   : > { %s4430_s25 = sshll.u32 %s5254_s30, 4  ;;  %s352_s24 = scalar_lea.vmem [#allocation7], %s5451_s13 }
  0x8a   : > { %s359_s21 = sshll.u32 %s352_s24, 4  ;;  %s357_s23 = scalar_lea.hbm %s6368_s1, %s4430_s25  ;;  %s360_s21 = int_to_ptr.vmem [resolvable:$true] %s359_s21 }
  0x8b   : > { %s6416_s0 = sand.u32 1, %s5254_s30   ;;  %s5142_s5 = scalar_lea.hbm %s357_s23, 16 }
  0x8c   : > { %s350_s4 = scalar_lea.sflag [#allocation8], %s6416_s0  ;;  %p5143_p1 = scmp.ne.s32.totalorder %s357_s23, %s5142_s5 }
  0x8d   : > { %s5147_s2 = scalar_lea.hbm %s6368_s1, 32  ;;  %p5148_p12 = scmp.lt.s32.totalorder %s357_s23, %s6368_s1 }
  0x8e   : > { %p5145_p6 = pnand %p5143_p1, %p5116_p7  ;;  %p5149_p13 = scmp.lt.s32.totalorder %s5147_s2, %s5142_s5 }
  0x90   : > { %p5146_p10 = pneg %p5145_p6  ;;  %p5150_p5 = por %p5149_p13, %p5148_p12 }
  0x92   : > { %p5151_p9 = pnand %p5150_p5, %p5146_p10 }
  0x94   : > { %5154 = shalt.err (!%p5151_p9)
}
  0x95   : > { %s5155_s26 = scalar_lea.vmem %s360_s21, 16  ;;  %s5267_s0 = smov [#allocation7]  }
  0x96   : > { %p5156_p8 = scmp.ne.s32.totalorder %s360_s21, %s5155_s26  ;;  %s5160_s3 = sshll.u32 %s5267_s0, 4  ;;  %s5161_s3 = int_to_ptr.vmem [resolvable:$false] %s5160_s3 }
  0x97   : > { %s5162_s6 = scalar_lea.vmem %s5161_s3, 32  ;;  %p5163_p2 = scmp.lt.s32.totalorder %s360_s21, %s5161_s3 }
  0x98   : > { %p5158_p4 = pnand %p5156_p8, %p5116_p7  ;;  %p5164_p1 = scmp.lt.s32.totalorder %s5162_s6, %s5155_s26 }
  0x9a   : > { %p5159_p0 = pneg %p5158_p4  ;;  %p5165_p6 = por %p5164_p1, %p5163_p2 }
  0x9c   : > { %p5166_p3 = pnand %p5165_p6, %p5159_p0 }
  0x9e   : > { %5169 = shalt.err (!%p5166_p3)
}
  0x9f   : > { %4654 = dma.hbm_to_vmem [thread:$0]  (!%p5472_p11), %s357_s23, 16, %s360_s21, %s350_s4  }
  0xa0   : > { %p6417_p10 = scmp.ne.s32.totalorder %s6399_s12, 0 }
  0xa2   : > { %368 = sbr.rel (%p6417_p10) target bundleno = 2069 (0x815), region = 52 }
  0xa7   : > { %s5531_s5 = sand.u32 1, %s5246_s28   ;;  %p6418_p7 = scmp.ne.s32.totalorder %s6409_s10, 0 }
  0xa8   : > { %s4432_s7 = sshll.u32 %s5531_s5, 4  ;;  %s371_s14 = scalar_lea.sflag [#allocation5], %s5531_s5 }
  0xa9   : > { %s5535_s25 = scalar_lea.vmem [#allocation4], %s4432_s7 }
  0xaa   : > { %5213 = dma.done.wait (%p6418_p7), %s371_s14, 256  }
  0xab   : > { %5215 = vsyncadd (%p6418_p7), %s371_s14, 4294967040  ;;  %s379_s4 = sand.u32 1, %s5342_s11   ;;  %s382_s20 = scalar_lea.vmem [#allocation7], %s5531_s5 }
  0xac   : > { %s380_s12 = scalar_lea.sflag [#allocation8], %s379_s4 }
  0xad   : > { %5217 = dma.done.wait (%p6418_p7), %s380_s12, 16  }
  0xae   : > { %5219 = vsyncadd (%p6418_p7), %s380_s12, 4294967280  ;;  %p6419_p3 = scmp.eq.s32.totalorder %s5342_s11, 0 }
  0xb0   : > { %5221 = dma.done.wait (%p6419_p3), [#allocation8], 3072   ;;  %p6420_p11 = pmov %p6419_p3 }
  0xb1   : > { %p6421_p12 = pmov %p6419_p3 }
  0xb2   : > { %5223 = vsyncadd (%p6420_p11), [#allocation8], 4294964224 }
  0xb3   : > { %5225 = dma.done.wait (%p6421_p12), [#allocation11], 13312   ;;  %p6422_p13 = pmov %p6419_p3 }
  0xb4   : > { %p6423_p5 = pmov %p6419_p3 }
  0xb5   : > { %5227 = vsyncadd (%p6422_p13), [#allocation11], 4294953984 }
  0xb6   : > { %5229 = dma.done.wait (%p6423_p5), [#allocation14], 2304   ;;  %p6424_p9 = pmov %p6419_p3 }
  0xb7   : > { %p6425_p8 = pmov %p6419_p3 }
  0xb8   : > { %5231 = vsyncadd (%p6424_p9), [#allocation14], 4294964992 }
  0xb9   : > { %5233 = dma.done.wait (%p6425_p8), [#allocation17], 512   ;;  %p6426_p4 = pmov %p6419_p3 }
  0xba   : > { %vm450_vm0 = vcmask 516096   ;;  %v5268_v0 = vmov 0   ;;  %v4722_v1 = vld [vmem:[#allocation9 + $0x74] ss:$8 sps:$4 sm:$0xff]   ;;  %v4724_v2 = vld [vmem:[#allocation9 + $0x70] ss:$8 sps:$4 sm:$0xff]  }
  0xbb   : > { %5235 = vsyncadd (%p6426_p4), [#allocation17], 4294966784  ;;  %451 = vst.msk [vmem:[#allocation2] sm:$0x1] %vm450_vm0, %v5268_v0  ;;  %589 = vmatprep.mubr.bf16.mxu0 %v5268_v0  ;;  %691 = vmatprep.mubr.bf16.mxu1 %v5268_v0  ;;  %v4725_v3 = vld [vmem:[#allocation9 + $0x64] ss:$8 sps:$4 sm:$0xff]  }
  0xbc   : > { %454 = vst [vmem:[#allocation3 + $0x8] sm:$0x11] %v5268_v0  ;;  %455 = vst [vmem:[#allocation3] sm:$0x22] %v5268_v0  ;;  %565 = vmatprep.subr.bf16.mxu0 %v4722_v1  ;;  %v4727_v4 = vld [vmem:[#allocation9 + $0x60] ss:$8 sps:$4 sm:$0xff]  }
  0xbd   : > { %566 = vmatpush1.bf16.msra.mxu0 %v4724_v2  ;;  %v4728_v5 = vld [vmem:[#allocation9 + $0x34] ss:$8 sps:$4 sm:$0xff]   ;;  %v4730_v6 = vld [vmem:[#allocation9 + $0x30] ss:$8 sps:$4 sm:$0xff]   ;;  %v4734_v8 = vld [vmem:[#allocation9 + $0x24] ss:$8 sps:$4 sm:$0xff]  }
  0xbe   : > { %567 = vmatprep.subr.bf16.mxu0 %v4725_v3  ;;  %v4731_v7 = vld [vmem:[#allocation9 + $0x54] ss:$8 sps:$4 sm:$0xff]   ;;  %667 = vmatprep.subr.bf16.mxu1 %v4728_v5  ;;  %v4736_v9 = vld [vmem:[#allocation9 + $0x20] ss:$8 sps:$4 sm:$0xff]   ;;  %v4733_v10 = vld [vmem:[#allocation9 + $0x50] ss:$8 sps:$4 sm:$0xff]  }
  0xbf   : > { %668 = vmatpush1.bf16.msra.mxu1 %v4730_v6  ;;  %v4737_v11 = vld [vmem:[#allocation9 + $0x44] ss:$8 sps:$4 sm:$0xff]   ;;  %v4740_v12 = vld [vmem:[#allocation9 + $0x14] ss:$8 sps:$4 sm:$0xff]   ;;  %vm464_vm1 = vcmask 1040384   ;;  %vm465_vm2 = vcmask 1044484  }
  0xc0   : > { %669 = vmatprep.subr.bf16.mxu1 %v4734_v8  ;;  %v4739_v13 = vld [vmem:[#allocation9 + $0x40] ss:$8 sps:$4 sm:$0xff]   ;;  %v4742_v14 = vld [vmem:[#allocation9 + $0x10] ss:$8 sps:$4 sm:$0xff]   ;;  %v4745_v18 = vld [vmem:[#allocation9 + $0xb4] ss:$8 sps:$4 sm:$0xff]  }
  0xc1   : > { %568 = vmatpush1.bf16.msra.mxu0 %v4727_v4  ;;  %v456_v15 = vld [vmem:[%s5535_s25] sm:$0xff]  ;;  %v457_v16 = vld [vmem:[%s5535_s25 + $0x8] sm:$0xff]  ;;  %vm475_vm3 = vcmask 519169   ;;  %vm5572_vm4 = vmor %vm464_vm1, %vm465_vm2  ;;  %vm477_vm5 = vcmask 519168   ;;  %vm509_vm6 = vcmask 1046528   ;;  %vm553_vm7 = vcmask 523264  }
  0xc2   : > { %569 = vmatprep.subr.bf16.mxu0 %v4731_v7  ;;  %v4594_v17 = vpack.c.bf16 %v456_v15, %v456_v15  ;;  %v4595_v19 = vpack.c.bf16 %v457_v16, %v457_v16  ;;  %v4748_v20 = vld [vmem:[#allocation9 + $0x4] ss:$8 sps:$4 sm:$0xff]   ;;  %v4750_v24 = vld [vmem:[#allocation9] ss:$8 sps:$4 sm:$0xff]   ;;  %v4743_v31 = vld [vmem:[#allocation9 + $0xb0] ss:$8 sps:$4 sm:$0xff]  }
  0xc3   : > { %670 = vmatpush1.bf16.msra.mxu1 %v4736_v9  ;;  %v4753_v40 = vld [vmem:[#allocation9 + $0xa4] ss:$8 sps:$4 sm:$0xff]   ;;  %v4751_v43 = vld [vmem:[#allocation9 + $0xa0] ss:$8 sps:$4 sm:$0xff]   ;;  %vm603_vm8 = vsmask.f32 7424 }
  0xc4   : > { %671 = vmatprep.subr.bf16.mxu1 %v4740_v12  ;;  %v467_v22 = vrot.slane %v4594_v17, 7  ;;  %v469_v23 = vrot.slane %v4595_v19, 7  ;;  %v4757_v46 = vld [vmem:[#allocation9 + $0x94] ss:$8 sps:$4 sm:$0xff]   ;;  %v4755_v53 = vld [vmem:[#allocation9 + $0x90] ss:$8 sps:$4 sm:$0xff]  }
  0xc5   : > { %570 = vmatpush1.bf16.msra.mxu0 %v4733_v10  ;;  %v4760_v54 = vld [vmem:[#allocation9 + $0x84] ss:$8 sps:$4 sm:$0xff]   ;;  %v4758_v59 = vld [vmem:[#allocation9 + $0x80] ss:$8 sps:$4 sm:$0xff]   ;;  %vm715_vm9 = vsmask.f32 6400 }
  0xc6   : > { %571 = vmatprep.subr.bf16.mxu0 %v4737_v11  ;;  %v468_v25 = vrot.slane %v467_v22, 4  ;;  %476 = vst.msk [vmem:[#allocation2] sm:$0xe] %vm475_vm3, %v467_v22  ;;  %v471_v26 = vrot.slane %v469_v23, 4  ;;  %v5591_v9 = vld [vmem:[#allocation15] sm:$0xff]  ;;  %v5593_v11 = vld [vmem:[#allocation15 + $0x8] sm:$0xff] }
  0xc7   : > { %672 = vmatpush1.bf16.msra.mxu1 %v4742_v14  ;;  %s5269_s10 = smov 64   ;;  %s5270_s24 = smov 96   ;;  %vm1487_vm10 = vcmask 261120   ;;  %vm886_vm11 = vcmask 130048  }
  0xc8   : > { %673 = vmatprep.subr.bf16.mxu1 %v4748_v20  ;;  %v470_v27 = vsel %vm5572_vm4, %v468_v25, %v469_v23  ;;  %479 = vst.msk [vmem:[#allocation2 + $0x8] sm:$0x1] %vm450_vm0, %v471_v26  ;;  %s5272_s21 = smov 112   ;;  %s4439_s15 = sshll.u32 %s5531_s5, 5 }
  0xc9   : > { %572 = vmatpush1.bf16.msra.mxu0 %v4739_v13  ;;  %478 = vst.msk [vmem:[#allocation2 + $0x4] sm:$0xf] %vm477_vm5, %v470_v27  ;;  %s442_s22 = scalar_lea.vmem [#allocation18], %s4439_s15  ;;  %s4598_s2 = sshll.u32 %s5342_s11, 9 }
  0xca   : > { %784 = vmatprep.subr.bf16.mxu0 %v4745_v18  ;;  %s4268_s23 = sshll.u32 %s442_s22, 4  ;;  %s6324_s26 = scalar_lea.hbm %s6375_s8, %s4598_s2  ;;  %s6319_s23 = int_to_ptr.vmem [resolvable:$true] %s4268_s23 }
  0xcb   : > { %674 = vmatpush1.bf16.msra.mxu1 %v4750_v24  ;;  %s4255_s11 = scalar_lea.sflag [#allocation6], %s5531_s5  ;;  %s5170_s0 = scalar_lea.vmem %s6319_s23, 512 }
  0xcc   : > { %p5171_p0 = scmp.ne.s32.totalorder %s6319_s23, %s5170_s0  ;;  %p6443_p2 = scmp.ne.s32.totalorder %s6410_s16, 0 }
  0xcd   : > { %v491_v28 = vld [vmem:[#allocation2] sm:$0xe]  ;;  %s5273_s3 = smov [#allocation18]  }
  0xce   : > { %v480_v29 = vld [vmem:[#allocation2] sm:$0xf]  ;;  %p5172_p1 = pnand %p5171_p0, %p6443_p2  ;;  %s5174_s6 = sshll.u32 %s5273_s3, 4  ;;  %s5175_s6 = int_to_ptr.vmem [resolvable:$false] %s5174_s6 }
  0xcf   : > { %v4747_v33 = vld [vmem:[#allocation2 + $0x8] ss:$0 sps:$4 sm:$0x11]   ;;  %s5176_s7 = scalar_lea.vmem %s5175_s6, 1024  ;;  %p5177_p10 = scmp.lt.s32.totalorder %s6319_s23, %s5175_s6 }
  0xd0   : > { %v481_v30 = vld [vmem:[#allocation2 + $0x4] sm:$0xf]  ;;  %v4761_v35 = vld [vmem:[#allocation2 + $0x8] ss:$0 sps:$4 sm:$0x33]   ;;  %v511_v37 = vrot.slane %v4747_v33, 1  ;;  %p5173_p6 = pneg %p5172_p1  ;;  %p5178_p7 = scmp.lt.s32.totalorder %s5176_s7, %s5170_s0 }
  0xd1   : > { %v4442_v32 = vcombine.low %v491_v28, %v481_v30  ;;  %v4453_v34 = vcombine.low %v480_v29, %v481_v30  ;;  %v612_v41 = vshll.u32 %v4747_v33, 16  ;;  %v725_v50 = vshrl.u32 %v4761_v35, 16 }
  0xd2   : > { %v728_v51 = vshll.u32 %v4761_v35, 16  ;;  %p5179_p3 = por %p5178_p7, %p5177_p10 }
  0xd3   : > { %v510_v36 = vrot.slane %v4442_v32, 1  ;;  %v605_v38 = vshrl.u32 %v4453_v34, 16  ;;  %v607_v39 = vshll.u32 %v4453_v34, 16  ;;  %v614_v45 = vrot.slane %v612_v41, 1 }
  0xd4   : > { %v717_v47 = vshrl.u32 %v4442_v32, 16  ;;  %v720_v49 = vshll.u32 %v4442_v32, 16  ;;  %v727_v57 = vrot.slane %v725_v50, 1  ;;  %v730_v58 = vrot.slane %v728_v51, 2  ;;  %p5180_p11 = pnand %p5179_p3, %p5173_p6 }
  0xd5   : > { %v512_v42 = vsel %vm509_vm6, %v510_v36, %v511_v37  ;;  %v609_v44 = vrot.slane %v607_v39, 1 }
  0xd6   : > { %4452 = vmatmul.mubr.msk.bf16.vlgmr.msra.gmra.mxu0 %vm553_vm7, %v512_v42  ;;  %v719_v55 = vrot.slane %v717_v47, 1  ;;  %v722_v56 = vrot.slane %v720_v49, 2  ;;  %v731_v61 = vor.u32 %v730_v58, %v727_v57 }
  0xd7   : > { %785 = vmatpush1.bf16.msra.mxu0 %v4743_v31  ;;  %v610_v48 = vor.u32 %v609_v44, %v605_v38  ;;  %808 = vmatprep.mubr.bf16.mxu0 %v5268_v0  ;;  %v823_v0 = vlaneseq }
  0xd8   : > { %786 = vmatprep.subr.bf16.mxu0 %v4753_v40  ;;  %v723_v60 = vor.u32 %v722_v56, %v719_v55 }
  0xd9   : > { %v615_v52 = vsel %vm603_vm8, %v610_v48, %v614_v45  ;;  %v5586_v3 = vshrl.u32 %v823_v0, 7 }
  0xda   : > { %4462 = vmatmul.mubr.msk.bf16.vlgmr.msra.gmra.mxu1 %vm553_vm7, %v615_v52  ;;  %v732_v62 = vsel %vm715_vm9, %v723_v60, %v731_v61 }
  0xdb   : > { %787 = vmatpush1.bf16.msra.mxu0 %v4751_v43  ;;  %v5589_v6 = vsub.s32 0, %v5586_v3 }
  0xdc   : > { %788 = vmatprep.subr.bf16.mxu0 %v4757_v46 }
  0xdd   : > { %v826_v15 = vrot.slane %v5591_v9, %v5589_v6  ;;  %v830_v18 = vrot.slane %v5593_v11, %v5589_v6 }
  0xdf   : > { %789 = vmatpush1.bf16.msra.mxu0 %v4755_v53 }
  0xe0   : > { %790 = vmatprep.subr.bf16.mxu0 %v4760_v54 }
  0xe3   : > { %791 = vmatpush1.bf16.msra.mxu0 %v4758_v59 }
  0xe6   : > { %4472 = vmatmul.mubr.msk.bf16.vlgmr.msra.gmra.mxu0 %vm553_vm7, %v732_v62 }
 0x196   : > { %v591_v63 = vpop.f32.mrf.mxu0 }
 0x198   : > { %v593_v1 = vpop.f32.mrf.mxu0 }
 0x19a   : > { %v693_v2 = vpop.f32.mrf.mxu1  ;;  %v595_v4 = vpop.f32.mrf.mxu0 }
 0x19b   : > { %v694_v10 = vadd.f32 %v693_v2, %v591_v63 }
 0x19c   : > { %v695_v5 = vpop.f32.mrf.mxu1  ;;  %v597_v7 = vpop.f32.mrf.mxu0 }
 0x19d   : > { %v696_v13 = vadd.f32 %v695_v5, %v593_v1  ;;  %v449_v5 = vld [vmem:[#allocation16 + $0x18] sm:$0xff] }
 0x19e   : > { %v697_v8 = vpop.f32.mrf.mxu1 }
 0x19f   : > { %v698_v19 = vadd.f32 %v697_v8, %v595_v4  ;;  %v448_v8 = vld [vmem:[#allocation16 + $0x10] sm:$0xff] }
 0x1a0   : > { %v699_v16 = vpop.f32.mrf.mxu1 }
 0x1a1   : > { %v700_v23 = vadd.f32 %v699_v16, %v597_v7  ;;  %v5623_v7 = vand.u32 4294901760, %v449_v5 }
 0x1a3   : > { %919 = vmatprep.subr.mxu1 %v5623_v7 }
 0x1a6   : > { %v810_v12 = vpop.f32.mrf.mxu0 }
 0x1a7   : > { %v819_v14 = vadd.f32 %v810_v12, %v694_v10  ;;  %v5625_v10 = vand.u32 4294901760, %v448_v8  ;;  %v447_v12 = vld [vmem:[#allocation16 + $0x8] sm:$0xff] }
 0x1a8   : > { %v812_v17 = vpop.f32.mrf.mxu0 }
 0x1a9   : > { %v820_v20 = vadd.f32 %v812_v17, %v696_v13  ;;  %v5599_v24 = vadd.f32 %v826_v15, %v819_v14  ;;  %v5628_v13 = vsub.f32 %v449_v5, %v5623_v7  ;;  %v5630_v14 = vand.u32 4294901760, %v447_v12  ;;  %921 = vmatpush1.msra.mxu1 %v5625_v10 }
 0x1aa   : > { %v814_v22 = vpop.f32.mrf.mxu0  ;;  %v5634_v16 = vsub.f32 %v448_v8, %v5625_v10 }
 0x1ab   : > { %v821_v25 = vadd.f32 %v814_v22, %v698_v19  ;;  %v5601_v26 = vadd.f32 %v830_v18, %v820_v20  ;;  %v849_v30 = vmul.f32 %v5599_v24, %v5599_v24  ;;  %v5643_v19 = vsub.f32 %v447_v12, %v5630_v14  ;;  %923 = vmatprep.subr.mxu1 %v5630_v14 }
 0x1ac   : > { %v816_v27 = vpop.f32.mrf.mxu0  ;;  %v5647_v20 = vand.u32 4294901760, %v5634_v16 }
 0x1ad   : > { %v5603_v28 = vadd.f32 %v826_v15, %v821_v25  ;;  %v822_v29 = vadd.f32 %v816_v27, %v700_v23  ;;  %v850_v34 = vmul.f32 %v5601_v26, %v5601_v26  ;;  %v446_v15 = vld [vmem:[#allocation16] sm:$0xff]  ;;  %v5655_v23 = vand.u32 4294901760, %v5643_v19 }
 0x1ae   : > { %v5636_v17 = vand.u32 4294901760, %v446_v15  ;;  %v5271_v27 = vmov 0.0  }
 0x1af   : > { %v835_v31 = vadd.f32 %v5603_v28, %v5599_v24  ;;  %v851_v32 = vmul.f32 %v5603_v28, %v5603_v28  ;;  %v5611_v33 = vadd.f32 %v830_v18, %v822_v29  ;;  %v5640_v18 = vand.u32 4294901760, %v5628_v13  ;;  %1297 = vmatprep.mubr.f32.mxu0 %v5271_v27  ;;  %958 = vmatprep.mubr.f32.mxu1 %v5271_v27 }
 0x1b0   : > { %v5650_v22 = vsub.f32 %v446_v15, %v5636_v17  ;;  %925 = vmatpush1.msra.mxu1 %v5636_v17 }
 0x1b1   : > { %v836_v35 = vrot.slane %v835_v31, 4  ;;  %v853_v36 = vadd.f32 %v851_v32, %v849_v30  ;;  %v842_v37 = vadd.f32 %v5611_v33, %v5601_v26  ;;  %v852_v38 = vmul.f32 %v5611_v33, %v5611_v33  ;;  %1252 = vmatprep.subr.mxu0 %v5640_v18 }
 0x1b2   : > { %1256 = vmatpush1.msra.mxu0 %v5647_v20  ;;  %v5659_v25 = vand.u32 4294901760, %v5650_v22  ;;  %v1001_v29 = vsub.f32 %v5628_v13, %v5640_v18 }
 0x1b3   : > { %v837_v39 = vadd.f32 %v836_v35, %v835_v31  ;;  %v854_v40 = vrot.slane %v853_v36, 4  ;;  %v843_v41 = vrot.slane %v842_v37, 4  ;;  %v860_v42 = vadd.f32 %v852_v38, %v850_v34  ;;  %1260 = vmatprep.subr.mxu0 %v5655_v23  ;;  %v1480_v34 = vld [vmem:[#allocation12 + $0x38] sm:$0xff] }
 0x1b4   : > { %1264 = vmatpush1.msra.mxu0 %v5659_v25  ;;  %v5667_v30 = vand.u32 4294901760, %v1001_v29  ;;  %v5671_v35 = vand.u32 4294901760, %v1480_v34 }
 0x1b5   : > { %v844_v43 = vadd.f32 %v843_v41, %v842_v37  ;;  %v861_v44 = vrot.slane %v860_v42, 4  ;;  %v838_v45 = vrot.slane %v837_v39, 2  ;;  %v855_v46 = vadd.f32 %v854_v40, %v853_v36  ;;  %v1465_v36 = vld [vmem:[%s382_s20] sm:$0x1] }
 0x1b6   : > { %1003 = vmatprep.subr.mxu1 %v5667_v30  ;;  %1516 = vmatprep.subr.mxu0 %v5671_v35  ;;  %v4477_v37 = vmul.f32 -1.442695, %v1465_v36 }
 0x1b7   : > { %v839_v47 = vadd.f32 %v838_v45, %v837_v39  ;;  %v845_v48 = vrot.slane %v844_v43, 2  ;;  %v856_v49 = vrot.slane %v855_v46, 2  ;;  %v862_v50 = vadd.f32 %v861_v44, %v860_v42 }
 0x1b8   : > { %4910 = vpow2.f32 %v4477_v37 }
 0x1b9   : > { %v846_v51 = vadd.f32 %v845_v48, %v844_v43  ;;  %v857_v52 = vadd.f32 %v856_v49, %v855_v46  ;;  %v863_v53 = vrot.slane %v862_v50, 2  ;;  %v840_v54 = vrot.slane %v839_v47, 1  ;;  %v1478_v49 = vld [vmem:[#allocation12 + $0x28] sm:$0xff] }
 0x1bb   : > { %v847_v55 = vrot.slane %v846_v51, 1  ;;  %v858_v56 = vrot.slane %v857_v52, 1  ;;  %v864_v57 = vadd.f32 %v863_v53, %v862_v50  ;;  %v841_v60 = vadd.f32 %v840_v54, %v839_v47  ;;  %v1479_v47 = vld [vmem:[#allocation12 + $0x30] sm:$0xff]  ;;  %v1476_v54 = vld [vmem:[#allocation12 + $0x18] sm:$0xff] }
 0x1bc   : > { %v5685_v53 = vand.u32 4294901760, %v1479_v47 }
 0x1bd   : > { %v859_v58 = vadd.f32 %v858_v56, %v857_v52  ;;  %v865_v59 = vrot.slane %v864_v57, 1  ;;  %v848_v61 = vadd.f32 %v847_v55, %v846_v51  ;;  %v1477_v51 = vld [vmem:[#allocation12 + $0x20] sm:$0xff]  ;;  %v5691_v56 = vand.u32 4294901760, %v1478_v49 }
 0x1bf   : > { %v866_v62 = vadd.f32 %v865_v59, %v864_v57  ;;  %v868_v63 = vsel %vm464_vm1, %v841_v60, %v859_v58  ;;  %v1475_v57 = vld [vmem:[#allocation12 + $0x10] sm:$0xff]  ;;  %v1007_v58 = vsub.f32 %v5634_v16, %v5647_v20  ;;  %v5696_v59 = vand.u32 4294901760, %v1477_v51  ;;  %v1474_v60 = vld [vmem:[#allocation12 + $0x8] sm:$0xff] }
 0x1c0   : > { %v5717_v8 = vand.u32 4294901760, %v1474_v60 }
 0x1c1   : > { %v869_v0 = vsel %vm464_vm1, %v848_v61, %v866_v62  ;;  %v1013_v62 = vsub.f32 %v5643_v19, %v5655_v23  ;;  %v5719_v12 = vand.u32 4294901760, %v1007_v58 }
 0x1c2   : > { %v870_v1 = vadd.f32 %v869_v0, %v868_v63  ;;  %v5703_v63 = vand.u32 4294901760, %v1476_v54  ;;  %v1473_v0 = vld [vmem:[#allocation12] sm:$0xff] }
 0x1c3   : > { %v5722_v15 = vand.u32 4294901760, %v1473_v0 }
 0x1c4   : > { %872 = vrot.lane.b32.xlu0 %v870_v1, %s5269_s10 }
 0x1c5   : > { %v4911_v38 = vpop.eup %4910 }
 0x1c6   : > { %v1469_v39 = vadd.f32 1.0, %v4911_v38  ;;  %v5737_v38 = vsub.f32 %v1479_v47, %v5685_v53  ;;  %v5763_v47 = vsub.f32 %v1474_v60, %v5717_v8 }
 0x1c8   : > { %4912 = vrcp.f32 %v1469_v39  ;;  %v5745_v39 = vsub.f32 %v1477_v51, %v5696_v59 }
 0x1d5   : > { %v4913_v40 = vpop.eup %4912 }
 0x1d6   : > { %v1472_v41 = vmul.f32 %v4913_v40, %v1465_v36 }
 0x1d8   : > { %v1489_v42 = vsel %vm1487_vm10, %v1472_v41, 0  ;;  %v5752_v41 = vsub.f32 %v1476_v54, %v5703_v63 }
 0x1d9   : > { %v5676_v43 = vand.u32 4294901760, %v1489_v42 }
 0x1da   : > { %v1625_v54 = vand.u32 4294901760, %v5752_v41 }
 0x1db   : > { %v5679_v45 = vsub.f32 %v1489_v42, %v5676_v43  ;;  %v1607_v42 = vand.u32 4294901760, %v5737_v38 }
 0x1dd   : > { %v1566_v52 = vand.u32 4294901760, %v5679_v45 }
 0x236   : > { %v873_v2 = vpop.permute.xlu0 %872 }
 0x237   : > { %v875_v4 = vadd.f32 %v873_v2, %v870_v1  ;;  %v1567_v1 = vsub.f32 %v5679_v45, %v1566_v52  ;;  %v1019_v2 = vsub.f32 %v5650_v22, %v5659_v25 }
 0x239   : > { %877 = vrot.lane.b32.xlu0 %v875_v4, %s5270_s24  ;;  %v1568_v36 = vand.u32 4294901760, %v1567_v1  ;;  %v5730_v37 = vand.u32 4294901760, %v1019_v2 }
 0x2ab   : > { %v878_v31 = vpop.permute.xlu0 %877 }
 0x2ac   : > { %v880_v32 = vadd.f32 %v878_v31, %v875_v4  ;;  %v5711_v4 = vand.u32 4294901760, %v1475_v57  ;;  %v5724_v31 = vand.u32 4294901760, %v1013_v62  ;;  %v1637_v62 = vand.u32 4294901760, %v5763_v47 }
 0x2ae   : > { %882 = vrot.lane.b32.xlu1 %v880_v32, %s5272_s21 }
 0x320   : > { %v883_v44 = vpop.permute.xlu1 %882 }
 0x321   : > { %v885_v46 = vadd.f32 %v883_v44, %v880_v32  ;;  %v5727_v32 = vsub.f32 %v1480_v34, %v5671_v35  ;;  %v5741_v34 = vsub.f32 %v1478_v49, %v5691_v56  ;;  %v5758_v44 = vsub.f32 %v1475_v57, %v5711_v4 }
 0x322   : > { %v5769_v49 = vsub.f32 %v1473_v0, %v5722_v15  ;;  %v1608_v57 = vsub.f32 %v5737_v38, %v1607_v42 }
 0x323   : > { %v888_v48 = vsel %vm886_vm11, %v885_v46, 0  ;;  %v1601_v40 = vand.u32 4294901760, %v5727_v32  ;;  %v1613_v46 = vand.u32 4294901760, %v5741_v34  ;;  %v1631_v58 = vand.u32 4294901760, %v5758_v44 }
 0x324   : > { %v5682_v50 = vand.u32 4294901760, %v888_v48  ;;  %v1643_v1 = vand.u32 4294901760, %v5769_v49 }
 0x325   : > { %v1602_v51 = vsub.f32 %v5727_v32, %v1601_v40  ;;  %v1614_v60 = vsub.f32 %v5741_v34, %v1613_v46 }
 0x326   : > { %v5688_v55 = vsub.f32 %v888_v48, %v5682_v50  ;;  %1299 = vmatmul.mubr.f32.vlgmr.msra.gmra.mxu0 %v5682_v50  ;;  %v1619_v48 = vand.u32 4294901760, %v5745_v39 }
 0x327   : > { %1518 = vmatpush1.msra.mxu0 %v5685_v53  ;;  %1563 = vmatprep.mubr.f32.mxu0 %v5271_v27  ;;  %v1603_v2 = vand.u32 4294901760, %v1602_v51  ;;  %v4794_v51 = vld [vmem:[#allocation10 + $0x34] ss:$8 sps:$4 sm:$0xff]  }
 0x328   : > { %v961_v61 = vand.u32 4294901760, %v5688_v55  ;;  %1520 = vmatprep.subr.mxu0 %v5691_v56  ;;  %v1620_v0 = vsub.f32 %v5745_v39, %v1619_v48 }
 0x329   : > { %1522 = vmatpush1.msra.mxu0 %v5696_v59 }
 0x32a   : > { %v962_v5 = vsub.f32 %v5688_v55, %v961_v61  ;;  %1524 = vmatprep.subr.mxu0 %v5703_v63 }
 0x32b   : > { %1526 = vmatpush1.msra.mxu0 %v5711_v4 }
 0x32c   : > { %v963_v29 = vand.u32 4294901760, %v962_v5  ;;  %1528 = vmatprep.subr.mxu0 %v5717_v8  ;;  %v1626_v5 = vsub.f32 %v5752_v41, %v1625_v54 }
 0x32d   : > { %1530 = vmatpush1.msra.mxu0 %v5722_v15 }
 0x32e   : > { %964 = vmatmul.mubr.f32.vlgmr.msra.gmra.mxu1 %v963_v29  ;;  %1713 = vmatprep.subr.mxu0 %v5727_v32  ;;  %v1609_v29 = vand.u32 4294901760, %v1608_v57  ;;  %v1632_v32 = vsub.f32 %v5758_v44, %v1631_v58  ;;  %v4792_v57 = vld [vmem:[#allocation10 + $0x30] ss:$8 sps:$4 sm:$0xff]  }
 0x32f   : > { %1009 = vmatpush1.msra.mxu1 %v5719_v12  ;;  %1054 = vmatprep.mubr.f32.mxu1 %v5271_v27 }
 0x330   : > { %1015 = vmatprep.subr.mxu1 %v5724_v31  ;;  %1569 = vmatmul.mubr.f32.vlgmr.msra.gmra.mxu0 %v1568_v36  ;;  %v1615_v36 = vand.u32 4294901760, %v1614_v60  ;;  %v4800_v60 = vld [vmem:[#allocation10 + $0x24] ss:$8 sps:$4 sm:$0xff]  }
 0x331   : > { %1021 = vmatpush1.msra.mxu1 %v5730_v37  ;;  %1716 = vmatpush1.msra.mxu0 %v5737_v38  ;;  %v1638_v38 = vsub.f32 %v5763_v47, %v1637_v62 }
 0x332   : > { %1092 = vmatprep.subr.mxu1 %v5628_v13  ;;  %1056 = vmatmul.mubr.f32.vlgmr.msra.gmra.mxu1 %v5682_v50 }
 0x333   : > { %1095 = vmatpush1.msra.mxu1 %v5634_v16  ;;  %1134 = vmatprep.mubr.f32.mxu1 %v5271_v27 }
 0x334   : > { %1098 = vmatprep.subr.mxu1 %v5643_v19  ;;  %1719 = vmatprep.subr.mxu0 %v5741_v34  ;;  %v1627_v34 = vand.u32 4294901760, %v1626_v5  ;;  %v4803_v5 = vld [vmem:[#allocation10 + $0x104] ss:$8 sps:$4 sm:$0xff]  }
 0x335   : > { %1101 = vmatpush1.msra.mxu1 %v5650_v22  ;;  %1722 = vmatpush1.msra.mxu0 %v5745_v39  ;;  %v1633_v39 = vand.u32 4294901760, %v1632_v32  ;;  %v4801_v32 = vld [vmem:[#allocation10 + $0x100] ss:$8 sps:$4 sm:$0xff]  }
 0x336   : > { %1172 = vmatprep.subr.mxu1 %v5623_v7  ;;  %1137 = vmatmul.mubr.f32.vlgmr.msra.gmra.mxu1 %v5688_v55  ;;  %v1621_v55 = vand.u32 4294901760, %v1620_v0  ;;  %v4798_v0 = vld [vmem:[#allocation10 + $0x20] ss:$8 sps:$4 sm:$0xff]  }
 0x337   : > { %1174 = vmatpush1.msra.mxu1 %v5625_v10  ;;  %1211 = vmatprep.mubr.f32.mxu1 %v5271_v27 }
 0x338   : > { %1176 = vmatprep.subr.mxu1 %v5630_v14  ;;  %1725 = vmatprep.subr.mxu0 %v5752_v41  ;;  %v1639_v41 = vand.u32 4294901760, %v1638_v38  ;;  %v4809_v38 = vld [vmem:[#allocation10 + $0x1f4] ss:$8 sps:$4 sm:$0xff]  }
 0x339   : > { %1178 = vmatpush1.msra.mxu1 %v5636_v17  ;;  %1728 = vmatpush1.msra.mxu0 %v5758_v44 }
 0x33a   : > { %1334 = vmatprep.subr.mxu1 %v5623_v7  ;;  %1215 = vmatmul.mubr.f32.vlgmr.msra.gmra.mxu1 %v961_v61  ;;  %v1644_v61 = vsub.f32 %v5769_v49, %v1643_v1 }
 0x33b   : > { %1336 = vmatpush1.msra.mxu1 %v5625_v10  ;;  %1373 = vmatprep.mubr.f32.mxu1 %v5271_v27 }
 0x33c   : > { %1338 = vmatprep.subr.mxu1 %v5630_v14  ;;  %1731 = vmatprep.subr.mxu0 %v5763_v47  ;;  %v1645_v44 = vand.u32 4294901760, %v1644_v61  ;;  %v4785_v47 = vld [vmem:[#allocation10 + $0x134] ss:$8 sps:$4 sm:$0xff]   ;;  %v4807_v61 = vld [vmem:[#allocation10 + $0x1f0] ss:$8 sps:$4 sm:$0xff]  }
 0x33d   : > { %1340 = vmatpush1.msra.mxu1 %v5636_v17  ;;  %1734 = vmatpush1.msra.mxu0 %v5769_v49  ;;  %v4783_v49 = vld [vmem:[#allocation10 + $0x130] ss:$8 sps:$4 sm:$0xff]  }
 0x33e   : > { %1375 = vmatmul.mubr.f32.vlgmr.msra.gmra.mxu1 %v5682_v50  ;;  %1604 = vmatprep.subr.mxu1 %v1603_v2  ;;  %v4770_v50 = vld [vmem:[#allocation10 + $0x74] ss:$8 sps:$4 sm:$0xff]  }
 0x33f   : > { %1610 = vmatpush1.msra.mxu1 %v1609_v29  ;;  %1679 = vmatprep.mubr.f32.mxu1 %v5271_v27  ;;  %v4806_v2 = vld [vmem:[#allocation10 + $0x14] ss:$8 sps:$4 sm:$0xff]   ;;  %v4804_v29 = vld [vmem:[#allocation10 + $0x10] ss:$8 sps:$4 sm:$0xff]  }
 0x340   : > { %1616 = vmatprep.subr.mxu1 %v1615_v36  ;;  %1767 = vmatprep.mubr.f32.mxu0 %v5271_v27  ;;  %v4812_v36 = vld [vmem:[#allocation10 + $0x4] ss:$8 sps:$4 sm:$0xff]  }
 0x341   : > { %1622 = vmatpush1.msra.mxu1 %v1621_v55  ;;  %1885 = vmatprep.subr.mxu0 %v1601_v40  ;;  %v4782_v40 = vld [vmem:[#allocation10 + $0x54] ss:$8 sps:$4 sm:$0xff]   ;;  %v4810_v55 = vld [vmem:[#allocation10] ss:$8 sps:$4 sm:$0xff]  }
 0x342   : > { %1628 = vmatprep.subr.mxu1 %v1627_v34  ;;  %1770 = vmatmul.mubr.f32.vlgmr.msra.gmra.mxu0 %v5679_v45  ;;  %v4762_v45 = vld [vmem:[#allocation10 + $0x170] ss:$8 sps:$4 sm:$0xff]   ;;  %v4818_v34 = vld [vmem:[#allocation10 + $0xf4] ss:$8 sps:$4 sm:$0xff]  }
 0x343   : > { %1634 = vmatpush1.msra.mxu1 %v1633_v39  ;;  %1889 = vmatpush1.msra.mxu0 %v1607_v42  ;;  %v4777_v42 = vld [vmem:[#allocation10 + $0x140] ss:$8 sps:$4 sm:$0xff]   ;;  %v4815_v39 = vld [vmem:[#allocation10 + $0x1e4] ss:$8 sps:$4 sm:$0xff]  }
 0x344   : > { %1640 = vmatprep.subr.mxu1 %v1639_v41  ;;  %1893 = vmatprep.subr.mxu0 %v1613_v46  ;;  %v4788_v46 = vld [vmem:[#allocation10 + $0x44] ss:$8 sps:$4 sm:$0xff]   ;;  %v4816_v41 = vld [vmem:[#allocation10 + $0xf0] ss:$8 sps:$4 sm:$0xff]  }
 0x345   : > { %1646 = vmatpush1.msra.mxu1 %v1645_v44  ;;  %1897 = vmatpush1.msra.mxu0 %v1619_v48  ;;  %v4786_v48 = vld [vmem:[#allocation10 + $0x40] ss:$8 sps:$4 sm:$0xff]  }
 0x346   : > { %1801 = vmatprep.subr.mxu1 %v5671_v35  ;;  %1681 = vmatmul.mubr.f32.vlgmr.msra.gmra.mxu1 %v5676_v43  ;;  %v4813_v44 = vld [vmem:[#allocation10 + $0x1e0] ss:$8 sps:$4 sm:$0xff]  }
 0x347   : > { %1803 = vmatpush1.msra.mxu1 %v5685_v53  ;;  %1848 = vmatprep.mubr.f32.mxu1 %v5271_v27 }
 0x348   : > { %1805 = vmatprep.subr.mxu1 %v5691_v56  ;;  %1901 = vmatprep.subr.mxu0 %v1625_v54  ;;  %v4791_v54 = vld [vmem:[#allocation10 + $0x124] ss:$8 sps:$4 sm:$0xff]  }
 0x349   : > { %1807 = vmatpush1.msra.mxu1 %v5696_v59  ;;  %1905 = vmatpush1.msra.mxu0 %v1631_v58  ;;  %v4789_v58 = vld [vmem:[#allocation10 + $0x120] ss:$8 sps:$4 sm:$0xff]  }
 0x34a   : > { %1809 = vmatprep.subr.mxu1 %v5703_v63  ;;  %1909 = vmatprep.subr.mxu0 %v1637_v62  ;;  %v4797_v62 = vld [vmem:[#allocation10 + $0x114] ss:$8 sps:$4 sm:$0xff]  }
 0x34b   : > { %1811 = vmatpush1.msra.mxu1 %v5711_v4  ;;  %1913 = vmatpush1.msra.mxu0 %v1643_v1  ;;  %v4795_v1 = vld [vmem:[#allocation10 + $0x110] ss:$8 sps:$4 sm:$0xff]  }
 0x34c   : > { %1813 = vmatprep.subr.mxu1 %v5717_v8  ;;  %1946 = vmatprep.mubr.f32.mxu0 %v5271_v27 }
 0x34d   : > { %1815 = vmatpush1.msra.mxu1 %v5722_v15  ;;  %1948 = vmatmul.mubr.f32.vlgmr.msra.gmra.mxu0 %v5676_v43 }
 0x34e   : > { %1979 = vmatprep.subr.mxu1 %v5671_v35  ;;  %1852 = vmatmul.mubr.f32.vlgmr.msra.gmra.mxu1 %v1566_v52  ;;  %v4764_v35 = vld [vmem:[#allocation10 + $0x174] ss:$8 sps:$4 sm:$0xff]   ;;  %v4767_v52 = vld [vmem:[#allocation10 + $0x164] ss:$8 sps:$4 sm:$0xff]  }
 0x34f   : > { %1981 = vmatpush1.msra.mxu1 %v5685_v53  ;;  %2026 = vmatprep.mubr.f32.mxu1 %v5271_v27  ;;  %v4768_v53 = vld [vmem:[#allocation10 + $0x70] ss:$8 sps:$4 sm:$0xff]  }
 0x350   : > { %1983 = vmatprep.subr.mxu1 %v5691_v56  ;;  %2317 = vmatprep.subr.bf16.mxu0 %v4764_v35  ;;  %v4765_v56 = vld [vmem:[#allocation10 + $0x160] ss:$8 sps:$4 sm:$0xff]   ;;  %v4824_v35 = vld [vmem:[#allocation10 + $0xe4] ss:$8 sps:$4 sm:$0xff]  }
 0x351   : > { %1985 = vmatpush1.msra.mxu1 %v5696_v59  ;;  %2318 = vmatpush1.bf16.msra.mxu0 %v4762_v45  ;;  %v4773_v59 = vld [vmem:[#allocation10 + $0x154] ss:$8 sps:$4 sm:$0xff]  }
 0x352   : > { %1987 = vmatprep.subr.mxu1 %v5703_v63  ;;  %2319 = vmatprep.subr.bf16.mxu0 %v4767_v52  ;;  %v4774_v63 = vld [vmem:[#allocation10 + $0x60] ss:$8 sps:$4 sm:$0xff]   ;;  %v4821_v45 = vld [vmem:[#allocation10 + $0x1d4] ss:$8 sps:$4 sm:$0xff]   ;;  %v4819_v52 = vld [vmem:[#allocation10 + $0x1d0] ss:$8 sps:$4 sm:$0xff]  }
 0x353   : > { %1989 = vmatpush1.msra.mxu1 %v5711_v4  ;;  %v4771_v4 = vld [vmem:[#allocation10 + $0x150] ss:$8 sps:$4 sm:$0xff]  }
 0x354   : > { %1991 = vmatprep.subr.mxu1 %v5717_v8  ;;  %v4776_v8 = vld [vmem:[#allocation10 + $0x64] ss:$8 sps:$4 sm:$0xff]  }
 0x355   : > { %1993 = vmatpush1.msra.mxu1 %v5722_v15  ;;  %2320 = vmatpush1.bf16.msra.mxu0 %v4765_v56  ;;  %v4779_v15 = vld [vmem:[#allocation10 + $0x144] ss:$8 sps:$4 sm:$0xff]  }
 0x356   : > { %2028 = vmatmul.mubr.f32.vlgmr.msra.gmra.mxu1 %v5676_v43  ;;  %2551 = vmatprep.subr.bf16.mxu1 %v4770_v50  ;;  %v4780_v43 = vld [vmem:[#allocation10 + $0x50] ss:$8 sps:$4 sm:$0xff]   ;;  %v4822_v50 = vld [vmem:[#allocation10 + $0xe0] ss:$8 sps:$4 sm:$0xff]   ;;  %v4827_v56 = vld [vmem:[#allocation10 + $0x1c4] ss:$8 sps:$4 sm:$0xff]  }
 0x357   : > { %2552 = vmatpush1.bf16.msra.mxu1 %v4768_v53  ;;  %2321 = vmatprep.subr.bf16.mxu0 %v4773_v59  ;;  %v4830_v53 = vld [vmem:[#allocation10 + $0xd4] ss:$8 sps:$4 sm:$0xff]   ;;  %v4828_v59 = vld [vmem:[#allocation10 + $0xd0] ss:$8 sps:$4 sm:$0xff]  }
 0x358   : > { %2553 = vmatprep.subr.bf16.mxu1 %v4776_v8  ;;  %v4833_v8 = vld [vmem:[#allocation10 + $0x1b4] ss:$8 sps:$4 sm:$0xff]  }
 0x359   : > { %2322 = vmatpush1.bf16.msra.mxu0 %v4771_v4  ;;  %v4836_v4 = vld [vmem:[#allocation10 + $0xc4] ss:$8 sps:$4 sm:$0xff]  }
 0x35a   : > { %2323 = vmatprep.subr.bf16.mxu0 %v4779_v15  ;;  %v4834_v15 = vld [vmem:[#allocation10 + $0xc0] ss:$8 sps:$4 sm:$0xff]  }
 0x35b   : > { %2554 = vmatpush1.bf16.msra.mxu1 %v4774_v63  ;;  %v4825_v63 = vld [vmem:[#allocation10 + $0x1c0] ss:$8 sps:$4 sm:$0xff]  }
 0x35c   : > { %2555 = vmatprep.subr.bf16.mxu1 %v4782_v40  ;;  %v4831_v40 = vld [vmem:[#allocation10 + $0x1b0] ss:$8 sps:$4 sm:$0xff]  }
 0x35d   : > { %2324 = vmatpush1.bf16.msra.mxu0 %v4777_v42  ;;  %v4839_v42 = vld [vmem:[#allocation10 + $0x1a4] ss:$8 sps:$4 sm:$0xff]  }
 0x35e   : > { %2325 = vmatprep.subr.bf16.mxu0 %v4785_v47  ;;  %v4837_v47 = vld [vmem:[#allocation10 + $0x1a0] ss:$8 sps:$4 sm:$0xff]  }
 0x35f   : > { %2556 = vmatpush1.bf16.msra.mxu1 %v4780_v43  ;;  %v4842_v43 = vld [vmem:[#allocation10 + $0xb4] ss:$8 sps:$4 sm:$0xff]  }
 0x360   : > { %2557 = vmatprep.subr.bf16.mxu1 %v4788_v46  ;;  %v4840_v46 = vld [vmem:[#allocation10 + $0xb0] ss:$8 sps:$4 sm:$0xff]  }
 0x361   : > { %2326 = vmatpush1.bf16.msra.mxu0 %v4783_v49  ;;  %v4846_v49 = vld [vmem:[#allocation10 + $0xa0] ss:$8 sps:$4 sm:$0xff]  }
 0x362   : > { %2327 = vmatprep.subr.bf16.mxu0 %v4791_v54  ;;  %v4843_v54 = vld [vmem:[#allocation10 + $0x190] ss:$8 sps:$4 sm:$0xff]  }
 0x363   : > { %2558 = vmatpush1.bf16.msra.mxu1 %v4786_v48  ;;  %v4845_v48 = vld [vmem:[#allocation10 + $0x194] ss:$8 sps:$4 sm:$0xff]  }
 0x364   : > { %2559 = vmatprep.subr.bf16.mxu1 %v4794_v51  ;;  %v4848_v51 = vld [vmem:[#allocation10 + $0xa4] ss:$8 sps:$4 sm:$0xff]  }
 0x365   : > { %2328 = vmatpush1.bf16.msra.mxu0 %v4789_v58  ;;  %v4851_v58 = vld [vmem:[#allocation10 + $0x184] ss:$8 sps:$4 sm:$0xff]  }
 0x366   : > { %2329 = vmatprep.subr.bf16.mxu0 %v4797_v62  ;;  %v4849_v62 = vld [vmem:[#allocation10 + $0x180] ss:$8 sps:$4 sm:$0xff]  }
 0x367   : > { %2560 = vmatpush1.bf16.msra.mxu1 %v4792_v57  ;;  %v4854_v57 = vld [vmem:[#allocation10 + $0x94] ss:$8 sps:$4 sm:$0xff]  }
 0x368   : > { %2561 = vmatprep.subr.bf16.mxu1 %v4800_v60  ;;  %v4852_v60 = vld [vmem:[#allocation10 + $0x90] ss:$8 sps:$4 sm:$0xff]  }
 0x369   : > { %2330 = vmatpush1.bf16.msra.mxu0 %v4795_v1  ;;  %v4858_v1 = vld [vmem:[#allocation10 + $0x274] ss:$8 sps:$4 sm:$0xff]  }
 0x36a   : > { %2331 = vmatprep.subr.bf16.mxu0 %v4803_v5 }
 0x36b   : > { %2562 = vmatpush1.bf16.msra.mxu1 %v4798_v0  ;;  %v4862_v0 = vld [vmem:[#allocation10 + $0x84] ss:$8 sps:$4 sm:$0xff]  }
 0x36c   : > { %2563 = vmatprep.subr.bf16.mxu1 %v4806_v2  ;;  %v4860_v2 = vld [vmem:[#allocation10 + $0x80] ss:$8 sps:$4 sm:$0xff]  }
 0x36d   : > { %2332 = vmatpush1.bf16.msra.mxu0 %v4801_v32 }
 0x36e   : > { %2333 = vmatprep.subr.bf16.mxu0 %v4809_v38 }
 0x36f   : > { %2564 = vmatpush1.bf16.msra.mxu1 %v4804_v29 }
 0x370   : > { %2565 = vmatprep.subr.bf16.mxu1 %v4812_v36 }
 0x371   : > { %2334 = vmatpush2.bf16.msra.mxu0 %v4807_v61 }
 0x372   : > { %2335 = vmatprep.subr.bf16.mxu0 %v4815_v39 }
 0x373   : > { %2566 = vmatpush1.bf16.msra.mxu1 %v4810_v55 }
 0x374   : > { %2567 = vmatprep.subr.bf16.mxu1 %v4818_v34 }
 0x375   : > { %2336 = vmatpush2.bf16.msra.mxu0 %v4813_v44 }
 0x376   : > { %2337 = vmatprep.subr.bf16.mxu0 %v4821_v45 }
 0x377   : > { %2568 = vmatpush2.bf16.msra.mxu1 %v4816_v41 }
 0x378   : > { %2569 = vmatprep.subr.bf16.mxu1 %v4824_v35 }
 0x379   : > { %2338 = vmatpush2.bf16.msra.mxu0 %v4819_v52 }
 0x37a   : > { %2339 = vmatprep.subr.bf16.mxu0 %v4827_v56 }
 0x37b   : > { %2570 = vmatpush2.bf16.msra.mxu1 %v4822_v50 }
 0x37c   : > { %2571 = vmatprep.subr.bf16.mxu1 %v4830_v53 }
 0x37d   : > { %2340 = vmatpush2.bf16.msra.mxu0 %v4825_v63 }
 0x37e   : > { %2341 = vmatprep.subr.bf16.mxu0 %v4833_v8 }
 0x37f   : > { %2572 = vmatpush2.bf16.msra.mxu1 %v4828_v59 }
 0x380   : > { %2573 = vmatprep.subr.bf16.mxu1 %v4836_v4 }
 0x381   : > { %2342 = vmatpush2.bf16.msra.mxu0 %v4831_v40 }
 0x382   : > { %2343 = vmatprep.subr.bf16.mxu0 %v4839_v42 }
 0x383   : > { %2574 = vmatpush2.bf16.msra.mxu1 %v4834_v15 }
 0x384   : > { %2575 = vmatprep.subr.bf16.mxu1 %v4842_v43 }
 0x385   : > { %2344 = vmatpush2.bf16.msra.mxu0 %v4837_v47 }
 0x386   : > { %2345 = vmatprep.subr.bf16.mxu0 %v4845_v48 }
 0x387   : > { %2576 = vmatpush2.bf16.msra.mxu1 %v4840_v46 }
 0x388   : > { %2577 = vmatprep.subr.bf16.mxu1 %v4848_v51 }
 0x389   : > { %2346 = vmatpush2.bf16.msra.mxu0 %v4843_v54 }
 0x38a   : > { %2347 = vmatprep.subr.bf16.mxu0 %v4851_v58 }
 0x38b   : > { %2578 = vmatpush2.bf16.msra.mxu1 %v4846_v49 }
 0x38c   : > { %2579 = vmatprep.subr.bf16.mxu1 %v4854_v57 }
 0x38d   : > { %2348 = vmatpush2.bf16.msra.mxu0 %v4849_v62  ;;  %v1427_v62 = vsub.s32 2, %v5586_v3 }
 0x38e   : > { %2829 = vmatprep.subr.bf16.mxu0 %v4858_v1  ;;  %v5833_v1 = vsub.s32 1, %v5586_v3 }
 0x38f   : > { %2580 = vmatpush2.bf16.msra.mxu1 %v4852_v60 }
 0x390   : > { %2581 = vmatprep.subr.bf16.mxu1 %v4862_v0  ;;  %6429 = vst [vmem:[#allocation26_spill] sm:$0xff] %v5833_v1 }
 0x393   : > { %2582 = vmatpush2.bf16.msra.mxu1 %v4860_v2 }
 0x394   : > { %2970 = vmatprep.subr.mxu1 %v5623_v7 }
 0x3e6   : > { %v1300_v41 = vpop.f32.mrf.mxu0 }
 0x3e8   : > { %v1302_v56 = vpop.f32.mrf.mxu0 }
 0x3ee   : > { %v965_v5 = vpop.f32.mrf.mxu1 }
 0x3f0   : > { %v967_v29 = vpop.f32.mrf.mxu1 }
 0x3f2   : > { %v1057_v32 = vpop.f32.mrf.mxu1 }
 0x3f3   : > { %v1058_v55 = vadd.f32 %v1057_v32, %v965_v5 }
 0x3f4   : > { %v1059_v36 = vpop.f32.mrf.mxu1 }
 0x3f5   : > { %v1060_v34 = vadd.f32 %v1059_v36, %v967_v29  ;;  %v1428_v36 = vrot.slane %v5591_v9, %v1427_v62 }
 0x3f6   : > { %v1138_v38 = vpop.f32.mrf.mxu1 }
 0x3f7   : > { %v1139_v39 = vadd.f32 %v1138_v38, %v1058_v55 }
 0x3f8   : > { %v1140_v61 = vpop.f32.mrf.mxu1 }
 0x3f9   : > { %v1141_v35 = vadd.f32 %v1140_v61, %v1060_v34 }
 0x3fa   : > { %v1216_v44 = vpop.f32.mrf.mxu1 }
 0x3fb   : > { %v1217_v45 = vadd.f32 %v1216_v44, %v1139_v39 }
 0x3fc   : > { %v1218_v50 = vpop.f32.mrf.mxu1 }
 0x3fd   : > { %v1219_v52 = vadd.f32 %v1218_v50, %v1141_v35  ;;  %v1301_v53 = vadd.f32 %v1300_v41, %v1217_v45  ;;  %v1432_v41 = vrot.slane %v5593_v11, %v1427_v62 }
 0x3fe   : > { %v1376_v59 = vpop.f32.mrf.mxu1 }
 0x3ff   : > { %v1377_v63 = vadd.f32 %v1376_v59, %v1301_v53  ;;  %v1303_v4 = vadd.f32 %v1302_v56, %v1219_v52 }
 0x400   : > { %v1378_v8 = vpop.f32.mrf.mxu1 }
 0x401   : > { %v1381_v15 = vmul.f32 0.001953125, %v1377_v63  ;;  %v1379_v40 = vadd.f32 %v1378_v8, %v1303_v4 }
 0x403   : > { %v1383_v43 = vmul.f32 %v1381_v15, %v1381_v15  ;;  %v1382_v42 = vmul.f32 0.001953125, %v1379_v40  ;;  %v1402_v0 = vrot.slane %v1381_v15, %v5589_v6  ;;  %v1483_v40 = vrot.slane %v5591_v9, 3 }
 0x405   : > { %v1387_v46 = vrot.slane %v1383_v43, 7  ;;  %v1384_v47 = vmul.f32 %v1382_v42, %v1382_v42  ;;  %v1406_v5 = vrot.slane %v1382_v42, %v5589_v6  ;;  %v1407_v38 = vsub.f32 %v5599_v24, %v1402_v0 }
 0x406   : > { %v1409_v55 = vsub.f32 %v5603_v28, %v1402_v0 }
 0x407   : > { %v1391_v48 = vsub.f32 %v1381_v15, %v1387_v46  ;;  %v1388_v49 = vrot.slane %v1384_v47, 7  ;;  %v1408_v39 = vsub.f32 %v5601_v26, %v1406_v5  ;;  %v1410_v45 = vsub.f32 %v5611_v33, %v1406_v5  ;;  %v1570_v26 = vpop.f32.mrf.mxu0 }
 0x408   : > { %v1484_v33 = vrot.slane %v5593_v11, 3  ;;  %v1571_v46 = vadd.f32 %v1570_v26, %v1483_v40 }
 0x409   : > { %v1393_v51 = vmax.f32 %v1391_v48, 0.0  ;;  %v1392_v54 = vsub.f32 %v1382_v42, %v1388_v49  ;;  %v1572_v43 = vpop.f32.mrf.mxu0  ;;  %v1682_v42 = vpop.f32.mrf.mxu1 }
 0x40a   : > { %v1573_v47 = vadd.f32 %v1572_v43, %v1484_v33 }
 0x40b   : > { %v1395_v57 = vadd.f32 1e-05, %v1393_v51  ;;  %v1394_v58 = vmax.f32 %v1392_v54, 0.0  ;;  %v1684_v48 = vpop.f32.mrf.mxu1  ;;  %v1771_v49 = vpop.f32.mrf.mxu0  ;;  %v1683_v51 = vadd.f32 %v1682_v42, %v1571_v46 }
 0x40c   : > { %v1685_v54 = vadd.f32 %v1684_v48, %v1573_v47 }
 0x40d   : > { %4914 = vrsqrt.f32 %v1395_v57  ;;  %v1396_v60 = vadd.f32 1e-05, %v1394_v58  ;;  %v1773_v58 = vpop.f32.mrf.mxu0 }
 0x40f   : > { %4916 = vrsqrt.f32 %v1396_v60  ;;  %v1853_v60 = vpop.f32.mrf.mxu1 }
 0x41a   : > { %v4915_v2 = vpop.eup %4914 }
 0x41b   : > { %v1411_v29 = vmul.f32 %v4915_v2, %v5591_v9  ;;  %v1774_v9 = vadd.f32 %v1773_v58, %v1685_v54 }
 0x41c   : > { %v4917_v32 = vpop.eup %4916 }
 0x41d   : > { %v1416_v61 = vrot.slane %v1411_v29, %v5833_v1  ;;  %v1412_v34 = vmul.f32 %v4917_v32, %v5593_v11  ;;  %v1772_v32 = vadd.f32 %v1771_v49, %v1683_v51 }
 0x41f   : > { %v1421_v44 = vmul.f32 %v1416_v61, %v1407_v38  ;;  %v1423_v35 = vmul.f32 %v1416_v61, %v1409_v55  ;;  %v1420_v50 = vrot.slane %v1412_v34, %v5833_v1  ;;  %v1949_v38 = vpop.f32.mrf.mxu0  ;;  %v1854_v61 = vadd.f32 %v1853_v60, %v1772_v32 }
 0x421   : > { %v1422_v52 = vmul.f32 %v1420_v50, %v1408_v39  ;;  %v1424_v53 = vmul.f32 %v1420_v50, %v1410_v45  ;;  %v1433_v56 = vadd.f32 %v1428_v36, %v1421_v44  ;;  %v1435_v24 = vadd.f32 %v1428_v36, %v1423_v35  ;;  %v1855_v36 = vpop.f32.mrf.mxu1  ;;  %v1951_v39 = vpop.f32.mrf.mxu0 }
 0x422   : > { %v1856_v34 = vadd.f32 %v1855_v36, %v1774_v9  ;;  %v1950_v44 = vadd.f32 %v1949_v38, %v1854_v61 }
 0x423   : > { %v4473_v59 = vmul.f32 -1.442695, %v1433_v56  ;;  %v4475_v28 = vmul.f32 -1.442695, %v1435_v24  ;;  %v1434_v63 = vadd.f32 %v1432_v41, %v1422_v52  ;;  %v1436_v4 = vadd.f32 %v1432_v41, %v1424_v53  ;;  %v2029_v41 = vpop.f32.mrf.mxu1 }
 0x424   : > { %v1952_v35 = vadd.f32 %v1951_v39, %v1856_v34  ;;  %v2030_v50 = vadd.f32 %v2029_v41, %v1950_v44 }
 0x425   : > { %4918 = vpow2.f32 %v4473_v59  ;;  %v4474_v8 = vmul.f32 -1.442695, %v1434_v63  ;;  %v4476_v15 = vmul.f32 -1.442695, %v1436_v4  ;;  %v2031_v45 = vpop.f32.mrf.mxu1 }
 0x426   : > { %4920 = vpow2.f32 %v4475_v28  ;;  %v2032_v52 = vadd.f32 %v2031_v45, %v1952_v35  ;;  %v2037_v40 = vrot.slane %v2030_v50, %v5589_v6 }
 0x427   : > { %4922 = vpow2.f32 %v4474_v8 }
 0x428   : > { %4924 = vpow2.f32 %v4476_v15  ;;  %v2041_v43 = vrot.slane %v2032_v52, %v5589_v6 }
 0x432   : > { %v4919_v57 = vpop.eup %4918 }
 0x433   : > { %v4921_v62 = vpop.eup %4920  ;;  %v1449_v0 = vadd.f32 1.0, %v4919_v57 }
 0x434   : > { %v4923_v2 = vpop.eup %4922  ;;  %v1451_v5 = vadd.f32 1.0, %v4921_v62 }
 0x435   : > { %v4925_v29 = vpop.eup %4924  ;;  %4926 = vrcp.f32 %v1449_v0  ;;  %v1450_v11 = vadd.f32 1.0, %v4923_v2 }
 0x436   : > { %4928 = vrcp.f32 %v1451_v5  ;;  %v1452_v55 = vadd.f32 1.0, %v4925_v29 }
 0x437   : > { %4930 = vrcp.f32 %v1450_v11 }
 0x438   : > { %4932 = vrcp.f32 %v1452_v55 }
 0x442   : > { %v4927_v53 = vpop.eup %4926 }
 0x443   : > { %v4929_v59 = vpop.eup %4928  ;;  %v1461_v28 = vmul.f32 %v4927_v53, %v1433_v56 }
 0x444   : > { %v4931_v8 = vpop.eup %4930  ;;  %v1463_v15 = vmul.f32 %v4929_v59, %v1435_v24  ;;  %v4856_v59 = vld [vmem:[#allocation10 + $0x270] ss:$8 sps:$4 sm:$0xff]  }
 0x445   : > { %v4933_v26 = vpop.eup %4932  ;;  %v1462_v33 = vmul.f32 %v4931_v8, %v1434_v63  ;;  %v2042_v46 = vadd.f32 %v2037_v40, %v1461_v28 }
 0x446   : > { %v1464_v42 = vmul.f32 %v4933_v26, %v1436_v4  ;;  %v2044_v48 = vadd.f32 %v2037_v40, %v1463_v15 }
 0x447   : > { %v2043_v47 = vadd.f32 %v2041_v43, %v1462_v33 }
 0x448   : > { %v2045_v49 = vadd.f32 %v2041_v43, %v1464_v42  ;;  %v4865_v42 = vld [vmem:[#allocation10 + $0x264] ss:$8 sps:$4 sm:$0xff]  }
 0x449   : > { %v4596_v51 = vpack.c.bf16 %v2043_v47, %v2042_v46 }
 0x44a   : > { %v4597_v54 = vpack.c.bf16 %v2045_v49, %v2044_v48 }
 0x44b   : > { %v2056_v57 = vrot.slane %v4596_v51, 7 }
 0x44c   : > { %v2058_v58 = vrot.slane %v4597_v54, 7 }
 0x44d   : > { %v2057_v60 = vrot.slane %v2056_v57, 4  ;;  %2064 = vst [vmem:[#allocation3 + $0x8] sm:$0xee] %v2056_v57  ;;  %v4863_v57 = vld [vmem:[#allocation10 + $0x260] ss:$8 sps:$4 sm:$0xff]  }
 0x44e   : > { %v2060_v56 = vrot.slane %v2058_v58, 4 }
 0x44f   : > { %v2059_v24 = vsel %vm5572_vm4, %v2057_v60, %v2058_v58 }
 0x450   : > { %2066 = vst [vmem:[#allocation3] sm:$0x11] %v2060_v56 }
 0x454   : > { %v2102_v62 = vld [vmem:[#allocation3 + $0x8] sm:$0xee] }
 0x455   : > { %v2067_v63 = vld [vmem:[#allocation3 + $0x8] sm:$0xff]  ;;  %v4481_v0 = vcombine.high %v2102_v62, %v2059_v24  ;;  %v5852_v2 = vcombine.low %v2102_v62, %v2059_v24 }
 0x456   : > { %v4517_v4 = vcombine.high %v2067_v63, %v2059_v24  ;;  %v4516_v5 = vcombine.low %v2067_v63, %v2059_v24  ;;  %v4869_v24 = vld [vmem:[#allocation10 + $0x254] ss:$8 sps:$4 sm:$0xff]  }
 0x457   : > { %v2069_v29 = vld [vmem:[#allocation3] sm:$0x11]  ;;  %v2152_v32 = vrot.slane %v4481_v0, 1  ;;  %v2149_v9 = vrot.slane %v5852_v2, 1  ;;  %v2651_v21 = vshrl.u32 %v4481_v0, 16  ;;  %v2654_v34 = vshll.u32 %v4481_v0, 16 }
 0x458   : > { %v2378_v11 = vshrl.u32 %v4517_v4, 16  ;;  %v2380_v36 = vshll.u32 %v4517_v4, 16  ;;  %v4483_v38 = vcombine.high %v2069_v29, %v2069_v29  ;;  %v4482_v55 = vcombine.low %v2069_v29, %v2069_v29  ;;  %v5855_v61 = vld [vmem:[#allocation3] sm:$0x33]  ;;  %v4867_v0 = vld [vmem:[#allocation10 + $0x250] ss:$8 sps:$4 sm:$0xff]  }
 0x459   : > { %v4551_v41 = vcombine.high %v5855_v61, %v5855_v61  ;;  %v2366_v44 = vshrl.u32 %v4516_v5, 16  ;;  %v2368_v35 = vshll.u32 %v4516_v5, 16  ;;  %v2653_v53 = vrot.slane %v2651_v21, 1  ;;  %v4872_v4 = vld [vmem:[#allocation10 + $0x244] ss:$8 sps:$4 sm:$0xff]  }
 0x45a   : > { %v2382_v39 = vrot.slane %v2380_v36, 1  ;;  %v2153_v45 = vrot.slane %v4483_v38, 1  ;;  %v2150_v50 = vrot.slane %v4482_v55, 1  ;;  %v2385_v52 = vshll.u32 %v4483_v38, 16  ;;  %v4870_v5 = vld [vmem:[#allocation10 + $0x240] ss:$8 sps:$4 sm:$0xff]  }
 0x45b   : > { %v2656_v8 = vrot.slane %v2654_v34, 2  ;;  %v2659_v15 = vshrl.u32 %v4551_v41, 16  ;;  %v2662_v26 = vshll.u32 %v4551_v41, 16  ;;  %v2370_v46 = vrot.slane %v2368_v35, 1  ;;  %v4875_v29 = vld [vmem:[#allocation10 + $0x234] ss:$8 sps:$4 sm:$0xff]  }
 0x45c   : > { %v2383_v28 = vor.u32 %v2382_v39, %v2378_v11  ;;  %v2154_v40 = vsel %vm509_vm6, %v2152_v32, %v2153_v45  ;;  %v2151_v33 = vsel %vm509_vm6, %v2149_v9, %v2150_v50  ;;  %v2387_v43 = vrot.slane %v2385_v52, 1  ;;  %v4873_v32 = vld [vmem:[#allocation10 + $0x230] ss:$8 sps:$4 sm:$0xff]   ;;  %v4878_v9 = vld [vmem:[#allocation10 + $0x224] ss:$8 sps:$4 sm:$0xff]  }
 0x45d   : > { %2349 = vmatprep.mubr.bf16.mxu0 %v2154_v40  ;;  %v2661_v47 = vrot.slane %v2659_v15, 1  ;;  %v2664_v48 = vrot.slane %v2662_v26, 2  ;;  %v2373_v49 = vshll.u32 %v4482_v55, 16  ;;  %v2371_v54 = vor.u32 %v2370_v46, %v2366_v44  ;;  %v4876_v11 = vld [vmem:[#allocation10 + $0x220] ss:$8 sps:$4 sm:$0xff]  }
 0x45e   : > { %2350 = vmatmul.mubr.bf16.vlgmr.msra.gmra.mxu0 %v2151_v33  ;;  %v2388_v51 = vsel %vm603_vm8, %v2383_v28, %v2387_v43  ;;  %v2657_v58 = vor.u32 %v2656_v8, %v2653_v53  ;;  %v4881_v36 = vld [vmem:[#allocation10 + $0x214] ss:$8 sps:$4 sm:$0xff]   ;;  %v4879_v38 = vld [vmem:[#allocation10 + $0x210] ss:$8 sps:$4 sm:$0xff]   ;;  %v4884_v55 = vld [vmem:[#allocation10 + $0x204] ss:$8 sps:$4 sm:$0xff]   ;;  %v4550_v28 = vcombine.low %v5855_v61, %v5855_v61 }
 0x45f   : > { %2830 = vmatpush1.bf16.msra.mxu0 %v4856_v59  ;;  %2583 = vmatprep.mubr.bf16.mxu1 %v2388_v51  ;;  %v2665_v60 = vor.u32 %v2664_v48, %v2661_v47  ;;  %v2375_v56 = vrot.slane %v2373_v49, 1  ;;  %v4882_v21 = vld [vmem:[#allocation10 + $0x200] ss:$8 sps:$4 sm:$0xff]   ;;  %v4885_v34 = vld [vmem:[#allocation10 + $0x2f0] ss:$8 sps:$4 sm:$0xff]   ;;  %v2634_v43 = vshrl.u32 %v5852_v2, 16 }
 0x460   : > { %2831 = vmatprep.subr.bf16.mxu0 %v4865_v42  ;;  %v4890_v39 = vld [vmem:[#allocation10 + $0x2e4] ss:$8 sps:$4 sm:$0xff]   ;;  %v4888_v41 = vld [vmem:[#allocation10 + $0x2e0] ss:$8 sps:$4 sm:$0xff]   ;;  %v4893_v44 = vld [vmem:[#allocation10 + $0x2d4] ss:$8 sps:$4 sm:$0xff]  }
 0x461   : > { %v2666_v62 = vsel %vm715_vm9, %v2657_v58, %v2665_v60  ;;  %v2376_v63 = vsel %vm603_vm8, %v2371_v54, %v2375_v56  ;;  %v4891_v35 = vld [vmem:[#allocation10 + $0x2d0] ss:$8 sps:$4 sm:$0xff]   ;;  %v4896_v45 = vld [vmem:[#allocation10 + $0x2c4] ss:$8 sps:$4 sm:$0xff]   ;;  %v4894_v50 = vld [vmem:[#allocation10 + $0x2c0] ss:$8 sps:$4 sm:$0xff]  }
 0x462   : > { %2861 = vmatprep.mubr.bf16.mxu0 %v2666_v62  ;;  %2584 = vmatmul.mubr.bf16.vlgmr.msra.gmra.mxu1 %v2376_v63  ;;  %v4899_v52 = vld [vmem:[#allocation10 + $0x2b4] ss:$8 sps:$4 sm:$0xff]   ;;  %v4897_v53 = vld [vmem:[#allocation10 + $0x2b0] ss:$8 sps:$4 sm:$0xff]   ;;  %v4902_v59 = vld [vmem:[#allocation10 + $0x2a4] ss:$8 sps:$4 sm:$0xff]  }
 0x463   : > { %2832 = vmatpush1.bf16.msra.mxu0 %v4863_v57  ;;  %2972 = vmatpush1.msra.mxu1 %v5625_v10  ;;  %v4900_v8 = vld [vmem:[#allocation10 + $0x2a0] ss:$8 sps:$4 sm:$0xff]   ;;  %v4905_v15 = vld [vmem:[#allocation10 + $0x294] ss:$8 sps:$4 sm:$0xff]   ;;  %v2642_v26 = vshrl.u32 %v4550_v28, 16  ;;  %v2645_v40 = vshll.u32 %v4550_v28, 16 }
 0x464   : > { %2833 = vmatprep.subr.bf16.mxu0 %v4869_v24  ;;  %2974 = vmatprep.subr.mxu1 %v5630_v14  ;;  %v4903_v33 = vld [vmem:[#allocation10 + $0x290] ss:$8 sps:$4 sm:$0xff]   ;;  %v2637_v42 = vshll.u32 %v5852_v2, 16  ;;  %v4908_v46 = vld [vmem:[#allocation10 + $0x284] ss:$8 sps:$4 sm:$0xff]   ;;  %v2636_v51 = vrot.slane %v2634_v43, 1 }
 0x465   : > { %2976 = vmatpush1.msra.mxu1 %v5636_v17  ;;  %3009 = vmatprep.mubr.f32.mxu1 %v5271_v27  ;;  %v2644_v47 = vrot.slane %v2642_v26, 1  ;;  %v2647_v48 = vrot.slane %v2645_v40, 2  ;;  %v4906_v49 = vld [vmem:[#allocation10 + $0x280] ss:$8 sps:$4 sm:$0xff]   ;;  %v2878_v63 = vsub.s32 4, %v5586_v3 }
 0x466   : > { %3054 = vmatprep.subr.mxu1 %v5667_v30  ;;  %v4887_v30 = vld [vmem:[#allocation10 + $0x2f4] ss:$8 sps:$4 sm:$0xff]   ;;  %v2639_v61 = vrot.slane %v2637_v42, 2 }
 0x467   : > { %2834 = vmatpush1.bf16.msra.mxu0 %v4867_v0  ;;  %v2648_v54 = vor.u32 %v2647_v48, %v2644_v47 }
 0x468   : > { %2835 = vmatprep.subr.bf16.mxu0 %v4872_v4  ;;  %v2640_v57 = vor.u32 %v2639_v61, %v2636_v51 }
 0x46a   : > { %v2649_v58 = vsel %vm715_vm9, %v2640_v57, %v2648_v54 }
 0x46b   : > { %2836 = vmatpush1.bf16.msra.mxu0 %v4870_v5 }
 0x46c   : > { %2837 = vmatprep.subr.bf16.mxu0 %v4875_v29 }
 0x46f   : > { %2838 = vmatpush1.bf16.msra.mxu0 %v4873_v32 }
 0x470   : > { %2839 = vmatprep.subr.bf16.mxu0 %v4878_v9 }
 0x473   : > { %2840 = vmatpush1.bf16.msra.mxu0 %v4876_v11  ;;  %v5876_v11 = vld [vmem:[#allocation15] sm:$0xff] }
 0x474   : > { %2841 = vmatprep.subr.bf16.mxu0 %v4881_v36  ;;  %v2879_v36 = vrot.slane %v5876_v11, %v2878_v63 }
 0x477   : > { %2842 = vmatpush1.bf16.msra.mxu0 %v4879_v38 }
 0x478   : > { %2843 = vmatprep.subr.bf16.mxu0 %v4884_v55 }
 0x47b   : > { %2844 = vmatpush1.bf16.msra.mxu0 %v4882_v21  ;;  %v5879_v21 = vld [vmem:[#allocation15 + $0x8] sm:$0xff] }
 0x47c   : > { %2845 = vmatprep.subr.bf16.mxu0 %v4887_v30  ;;  %6430 = vst [vmem:[#allocation27_spill] sm:$0xff] %v5879_v21  ;;  %v2883_v30 = vrot.slane %v5879_v21, %v2878_v63 }
 0x47f   : > { %2846 = vmatpush2.bf16.msra.mxu0 %v4885_v34 }
 0x480   : > { %2847 = vmatprep.subr.bf16.mxu0 %v4890_v39 }
 0x483   : > { %2848 = vmatpush2.bf16.msra.mxu0 %v4888_v41 }
 0x484   : > { %2849 = vmatprep.subr.bf16.mxu0 %v4893_v44 }
 0x487   : > { %2850 = vmatpush2.bf16.msra.mxu0 %v4891_v35 }
 0x488   : > { %2851 = vmatprep.subr.bf16.mxu0 %v4896_v45 }
 0x48b   : > { %2852 = vmatpush2.bf16.msra.mxu0 %v4894_v50 }
 0x48c   : > { %2853 = vmatprep.subr.bf16.mxu0 %v4899_v52 }
 0x48f   : > { %2854 = vmatpush2.bf16.msra.mxu0 %v4897_v53 }
 0x490   : > { %2855 = vmatprep.subr.bf16.mxu0 %v4902_v59 }
 0x493   : > { %2856 = vmatpush2.bf16.msra.mxu0 %v4900_v8 }
 0x494   : > { %2857 = vmatprep.subr.bf16.mxu0 %v4905_v15 }
 0x497   : > { %2858 = vmatpush2.bf16.msra.mxu0 %v4903_v33 }
 0x498   : > { %2859 = vmatprep.subr.bf16.mxu0 %v4908_v46 }
 0x49b   : > { %2860 = vmatpush2.bf16.msra.mxu0 %v4906_v49 }
 0x49e   : > { %2862 = vmatmul.mubr.bf16.vlgmr.msra.gmra.mxu0 %v2649_v58 }
 0x49f   : > { %4005 = vmatprep.mubr.f32.mxu0 %v5271_v27 }
 0x51e   : > { %v2351_v60 = vpop.f32.mrf.mxu0 }
 0x520   : > { %v2353_v56 = vpop.f32.mrf.mxu0 }
 0x522   : > { %v2585_v2 = vpop.f32.mrf.mxu1  ;;  %v2355_v24 = vpop.f32.mrf.mxu0 }
 0x523   : > { %v2586_v5 = vadd.f32 %v2585_v2, %v2351_v60 }
 0x524   : > { %v2587_v62 = vpop.f32.mrf.mxu1  ;;  %v2357_v0 = vpop.f32.mrf.mxu0 }
 0x525   : > { %v2588_v32 = vadd.f32 %v2587_v62, %v2353_v56 }
 0x526   : > { %v2589_v4 = vpop.f32.mrf.mxu1 }
 0x527   : > { %v2590_v34 = vadd.f32 %v2589_v4, %v2355_v24 }
 0x528   : > { %v2591_v38 = vpop.f32.mrf.mxu1 }
 0x529   : > { %v2592_v44 = vadd.f32 %v2591_v38, %v2357_v0 }
 0x55e   : > { %v2863_v29 = vpop.f32.mrf.mxu0 }
 0x55f   : > { %v2872_v9 = vadd.f32 %v2863_v29, %v2586_v5 }
 0x560   : > { %v2865_v55 = vpop.f32.mrf.mxu0 }
 0x561   : > { %v2873_v39 = vadd.f32 %v2865_v55, %v2588_v32  ;;  %v5882_v35 = vadd.f32 %v2879_v36, %v2872_v9 }
 0x562   : > { %v2867_v41 = vpop.f32.mrf.mxu0 }
 0x563   : > { %6431 = vst [vmem:[#allocation28_spill] sm:$0xff] %v5882_v35  ;;  %v2874_v45 = vadd.f32 %v2867_v41, %v2590_v34  ;;  %v5884_v50 = vadd.f32 %v2883_v30, %v2873_v39  ;;  %v2902_v28 = vmul.f32 %v5882_v35, %v5882_v35 }
 0x564   : > { %v2869_v52 = vpop.f32.mrf.mxu0 }
 0x565   : > { %6432 = vst [vmem:[#allocation29_spill] sm:$0xff] %v5884_v50  ;;  %v5886_v53 = vadd.f32 %v2879_v36, %v2874_v45  ;;  %v2875_v59 = vadd.f32 %v2869_v52, %v2592_v44  ;;  %v2903_v40 = vmul.f32 %v5884_v50, %v5884_v50 }
 0x567   : > { %6433 = vst [vmem:[#allocation30_spill] sm:$0xff] %v5886_v53  ;;  %v2888_v8 = vadd.f32 %v5886_v53, %v5882_v35  ;;  %v2904_v15 = vmul.f32 %v5886_v53, %v5886_v53  ;;  %v5894_v26 = vadd.f32 %v2883_v30, %v2875_v59 }
 0x569   : > { %6434 = vst [vmem:[#allocation31_spill] sm:$0xff] %v5894_v26  ;;  %v2889_v33 = vrot.slane %v2888_v8, 4  ;;  %v2906_v43 = vadd.f32 %v2904_v15, %v2902_v28  ;;  %v2895_v42 = vadd.f32 %v5894_v26, %v5884_v50  ;;  %v2905_v46 = vmul.f32 %v5894_v26, %v5894_v26  ;;  %v5910_v28 = vld [vmem:[#allocation13 + $0x78] sm:$0xff]  ;;  %v5915_v15 = vld [vmem:[#allocation13 + $0x70] sm:$0xff] }
 0x56b   : > { %v2890_v47 = vadd.f32 %v2889_v33, %v2888_v8  ;;  %v2907_v48 = vrot.slane %v2906_v43, 4  ;;  %v2896_v49 = vrot.slane %v2895_v42, 4  ;;  %v2913_v51 = vadd.f32 %v2905_v46, %v2903_v40  ;;  %v5920_v33 = vld [vmem:[#allocation13 + $0x68] sm:$0xff] }
 0x56c   : > { %v5913_v8 = vand.u32 4294901760, %v5910_v28  ;;  %v5918_v40 = vand.u32 4294901760, %v5915_v15 }
 0x56d   : > { %v2891_v61 = vrot.slane %v2890_v47, 2  ;;  %v2908_v54 = vadd.f32 %v2907_v48, %v2906_v43  ;;  %v2897_v57 = vadd.f32 %v2896_v49, %v2895_v42  ;;  %v2914_v58 = vrot.slane %v2913_v51, 4  ;;  %v5925_v42 = vld [vmem:[#allocation13 + $0x60] sm:$0xff]  ;;  %v5937_v49 = vld [vmem:[#allocation13 + $0x50] sm:$0xff] }
 0x56e   : > { %v5923_v43 = vand.u32 4294901760, %v5920_v33  ;;  %3942 = vmatprep.subr.mxu0 %v5913_v8  ;;  %v5929_v46 = vand.u32 4294901760, %v5925_v42 }
 0x56f   : > { %v2892_v60 = vadd.f32 %v2891_v61, %v2890_v47  ;;  %v2909_v56 = vrot.slane %v2908_v54, 2  ;;  %v2898_v2 = vrot.slane %v2897_v57, 2  ;;  %v2915_v24 = vadd.f32 %v2914_v58, %v2913_v51  ;;  %v5931_v47 = vld [vmem:[#allocation13 + $0x58] sm:$0xff]  ;;  %3944 = vmatpush1.msra.mxu0 %v5918_v40  ;;  %v5943_v61 = vld [vmem:[#allocation13 + $0x48] sm:$0xff] }
 0x570   : > { %v5935_v48 = vand.u32 4294901760, %v5931_v47  ;;  %3946 = vmatprep.subr.mxu0 %v5923_v43  ;;  %v5941_v51 = vand.u32 4294901760, %v5937_v49  ;;  %v5949_v58 = vand.u32 4294901760, %v5943_v61 }
 0x571   : > { %v2899_v62 = vadd.f32 %v2898_v2, %v2897_v57  ;;  %v2916_v63 = vrot.slane %v2915_v24, 2  ;;  %v2910_v0 = vadd.f32 %v2909_v56, %v2908_v54  ;;  %v2893_v4 = vrot.slane %v2892_v60, 1  ;;  %3948 = vmatpush1.msra.mxu0 %v5929_v46  ;;  %v4956_v54 = vld [vmem:[%s5535_s25] sm:$0xff] }
 0x572   : > { %v3545_v57 = vsel %vm553_vm7, %v4956_v54, 0  ;;  %3950 = vmatprep.subr.mxu0 %v5935_v48  ;;  %v5957_v2 = vld [vmem:[#allocation13 + $0x38] sm:$0xff] }
 0x573   : > { %v2900_v5 = vrot.slane %v2899_v62, 1  ;;  %v2911_v29 = vrot.slane %v2910_v0, 1  ;;  %v2917_v32 = vadd.f32 %v2916_v63, %v2915_v24  ;;  %v2894_v38 = vadd.f32 %v2893_v4, %v2892_v60  ;;  %v5951_v60 = vld [vmem:[#allocation13 + $0x40] sm:$0xff]  ;;  %3952 = vmatpush1.msra.mxu0 %v5941_v51  ;;  %v5971_v4 = vld [vmem:[#allocation13 + $0x28] sm:$0xff] }
 0x574   : > { %v5955_v56 = vand.u32 4294901760, %v5951_v60  ;;  %v5961_v24 = vand.u32 4294901760, %v5957_v2  ;;  %3954 = vmatprep.subr.mxu0 %v5949_v58  ;;  %v5966_v63 = vand.u32 4294901760, %v3545_v57 }
 0x575   : > { %v2912_v9 = vadd.f32 %v2911_v29, %v2910_v0  ;;  %v2918_v36 = vrot.slane %v2917_v32, 1  ;;  %v2901_v55 = vadd.f32 %v2900_v5, %v2899_v62  ;;  %v5963_v62 = vld [vmem:[#allocation13 + $0x30] sm:$0xff]  ;;  %v5975_v5 = vand.u32 4294901760, %v5971_v4  ;;  %v5977_v29 = vld [vmem:[#allocation13 + $0x20] sm:$0xff] }
 0x576   : > { %v5969_v0 = vand.u32 4294901760, %v5963_v62  ;;  %3956 = vmatpush1.msra.mxu0 %v5955_v56 }
 0x577   : > { %v2919_v30 = vadd.f32 %v2918_v36, %v2917_v32  ;;  %v2920_v34 = vsel %vm464_vm1, %v2894_v38, %v2912_v9  ;;  %3958 = vmatprep.subr.mxu0 %v5961_v24  ;;  %v5981_v32 = vand.u32 4294901760, %v5977_v29  ;;  %v5983_v9 = vld [vmem:[#allocation13 + $0x18] sm:$0xff]  ;;  %v5989_v38 = vld [vmem:[#allocation13 + $0x10] sm:$0xff] }
 0x578   : > { %3960 = vmatpush1.msra.mxu0 %v5969_v0  ;;  %v5987_v36 = vand.u32 4294901760, %v5983_v9 }
 0x579   : > { %v2921_v39 = vsel %vm464_vm1, %v2901_v55, %v2919_v30  ;;  %3962 = vmatprep.subr.mxu0 %v5975_v5  ;;  %v5993_v55 = vand.u32 4294901760, %v5989_v38  ;;  %v5995_v30 = vld [vmem:[#allocation13 + $0x8] sm:$0xff] }
 0x57a   : > { %v2922_v41 = vadd.f32 %v2921_v39, %v2920_v34  ;;  %v5998_v34 = vsub.f32 %v3545_v57, %v5966_v63  ;;  %3964 = vmatpush1.msra.mxu0 %v5981_v32  ;;  %v6002_v39 = vand.u32 4294901760, %v5995_v30 }
 0x57b   : > { %3966 = vmatprep.subr.mxu0 %v5987_v36 }
 0x57c   : > { %2924 = vrot.lane.b32.xlu1 %v2922_v41, %s5269_s10  ;;  %3968 = vmatpush1.msra.mxu0 %v5993_v55 }
 0x57d   : > { %3970 = vmatprep.subr.mxu0 %v6002_v39 }
 0x5ee   : > { %v2925_v44 = vpop.permute.xlu1 %2924 }
 0x5ef   : > { %v2927_v45 = vadd.f32 %v2925_v44, %v2922_v41  ;;  %v6004_v41 = vld [vmem:[#allocation13] sm:$0xff] }
 0x5f0   : > { %v6008_v44 = vand.u32 4294901760, %v6004_v41 }
 0x5f1   : > { %2929 = vrot.lane.b32.xlu0 %v2927_v45, %s5270_s24 }
 0x5f2   : > { %3972 = vmatpush1.msra.mxu0 %v6008_v44 }
 0x5f3   : > { %4168 = vmatprep.subr.mxu0 %v5913_v8 }
 0x663   : > { %v2930_v52 = vpop.permute.xlu0 %2929 }
 0x664   : > { %v5906_v59 = vadd.f32 %v2930_v52, %v2927_v45  ;;  %v6382_v45 = vand.u32 4294901760, %v5998_v34  ;;  %v4957_v52 = vld [vmem:[%s5535_s25 + $0x8] sm:$0xff] }
 0x665   : > { %v3548_v54 = vsel %vm553_vm7, %v4957_v52, 0 }
 0x666   : > { %2934 = vrot.lane.b32.xlu1 %v5906_v59, %s5272_s21  ;;  %4009 = vmatmul.mubr.f32.vlgmr.msra.gmra.mxu0 %v6382_v45  ;;  %v6025_v57 = vand.u32 4294901760, %v3548_v54 }
 0x667   : > { %4170 = vmatpush1.msra.mxu0 %v5918_v40  ;;  %4014 = vmatprep.mubr.f32.mxu0 %v5271_v27 }
 0x668   : > { %4172 = vmatprep.subr.mxu0 %v5923_v43  ;;  %v6030_v45 = vsub.f32 %v3548_v54, %v6025_v57 }
 0x669   : > { %4174 = vmatpush1.msra.mxu0 %v5929_v46 }
 0x66a   : > { %4176 = vmatprep.subr.mxu0 %v5935_v48  ;;  %v6384_v52 = vand.u32 4294901760, %v6030_v45 }
 0x66b   : > { %4178 = vmatpush1.msra.mxu0 %v5941_v51 }
 0x66c   : > { %4180 = vmatprep.subr.mxu0 %v5949_v58  ;;  %4018 = vmatmul.mubr.f32.gmra.mxu0 %v6384_v52 }
 0x66d   : > { %4182 = vmatpush1.msra.mxu0 %v5955_v56  ;;  %4231 = vmatprep.mubr.f32.mxu0 %v5271_v27 }
 0x66e   : > { %4184 = vmatprep.subr.mxu0 %v5961_v24 }
 0x66f   : > { %4186 = vmatpush1.msra.mxu0 %v5969_v0 }
 0x670   : > { %4188 = vmatprep.subr.mxu0 %v5975_v5 }
 0x671   : > { %4190 = vmatpush1.msra.mxu0 %v5981_v32 }
 0x672   : > { %4192 = vmatprep.subr.mxu0 %v5987_v36 }
 0x673   : > { %4194 = vmatpush1.msra.mxu0 %v5993_v55 }
 0x674   : > { %4196 = vmatprep.subr.mxu0 %v6002_v39 }
 0x675   : > { %4198 = vmatpush1.msra.mxu0 %v6008_v44 }
 0x676   : > { %4233 = vmatmul.mubr.f32.vlgmr.msra.gmra.mxu0 %v5966_v63 }
 0x677   : > { %4238 = vmatprep.mubr.f32.mxu0 %v5271_v27 }
 0x67a   : > { %4240 = vmatmul.mubr.f32.gmra.mxu0 %v6025_v57 }
 0x6d8   : > { %v2935_v54 = vpop.permute.xlu1 %2934 }
 0x6d9   : > { %v2937_v26 = vadd.f32 %v2935_v54, %v5906_v59 }
 0x6db   : > { %v2939_v52 = vsel %vm886_vm11, %v2937_v26, 0  ;;  %v6142_v26 = vsub.f32 %v5977_v29, %v5981_v32 }
 0x6dc   : > { %v3010_v50 = vand.u32 4294901760, %v2939_v52 }
 0x6dd   : > { %v3737_v29 = vand.u32 4294901760, %v6142_v26 }
 0x6de   : > { %v3011_v1 = vsub.f32 %v2939_v52, %v3010_v50 }
 0x6e0   : > { %v3012_v53 = vand.u32 4294901760, %v3011_v1 }
 0x6e2   : > { %v3013_v35 = vsub.f32 %v3011_v1, %v3012_v53 }
 0x6e4   : > { %v3014_v21 = vand.u32 4294901760, %v3013_v35  ;;  %v6133_v35 = vsub.f32 %v5963_v62, %v5969_v0  ;;  %v6185_v62 = vsub.f32 %v5995_v30, %v6002_v39 }
 0x6e6   : > { %3015 = vmatmul.mubr.f32.vlgmr.msra.gmra.mxu1 %v3014_v21  ;;  %v6128_v21 = vsub.f32 %v5957_v2, %v5961_v24  ;;  %v3755_v52 = vand.u32 4294901760, %v6185_v62 }
 0x6e7   : > { %3060 = vmatpush1.msra.mxu1 %v5719_v12  ;;  %3105 = vmatprep.mubr.f32.mxu1 %v5271_v27 }
 0x6e8   : > { %3066 = vmatprep.subr.mxu1 %v5724_v31 }
 0x6e9   : > { %3072 = vmatpush1.msra.mxu1 %v5730_v37 }
 0x6ea   : > { %3143 = vmatprep.subr.mxu1 %v5628_v13  ;;  %3107 = vmatmul.mubr.f32.vlgmr.msra.gmra.mxu1 %v3010_v50  ;;  %v6075_v13 = vsub.f32 %v5910_v28, %v5913_v8 }
 0x6eb   : > { %3146 = vmatpush1.msra.mxu1 %v5634_v16  ;;  %3185 = vmatprep.mubr.f32.mxu1 %v5271_v27 }
 0x6ec   : > { %3149 = vmatprep.subr.mxu1 %v5643_v19  ;;  %v3671_v16 = vand.u32 4294901760, %v6075_v13 }
 0x6ed   : > { %3152 = vmatpush1.msra.mxu1 %v5650_v22  ;;  %v6110_v22 = vsub.f32 %v5943_v61, %v5949_v58 }
 0x6ee   : > { %3223 = vmatprep.subr.mxu1 %v5623_v7  ;;  %3188 = vmatmul.mubr.f32.vlgmr.msra.gmra.mxu1 %v3011_v1  ;;  %v3672_v31 = vsub.f32 %v6075_v13, %v3671_v16 }
 0x6ef   : > { %3225 = vmatpush1.msra.mxu1 %v5625_v10  ;;  %3262 = vmatprep.mubr.f32.mxu1 %v5271_v27  ;;  %v3707_v28 = vand.u32 4294901760, %v6110_v22 }
 0x6f0   : > { %3227 = vmatprep.subr.mxu1 %v5630_v14 }
 0x6f1   : > { %3229 = vmatpush1.msra.mxu1 %v5636_v17  ;;  %v3708_v2 = vsub.f32 %v6110_v22, %v3707_v28 }
 0x6f2   : > { %3303 = vmatprep.subr.mxu1 %v5640_v18  ;;  %3266 = vmatmul.mubr.f32.vlgmr.msra.gmra.mxu1 %v3012_v53  ;;  %v6103_v18 = vsub.f32 %v5937_v49, %v5941_v51  ;;  %v6167_v49 = vsub.f32 %v5983_v9, %v5987_v36 }
 0x6f3   : > { %3307 = vmatpush1.msra.mxu1 %v5647_v20  ;;  %3348 = vmatprep.mubr.f32.mxu1 %v5271_v27 }
 0x6f4   : > { %3311 = vmatprep.subr.mxu1 %v5655_v23  ;;  %v6115_v23 = vsub.f32 %v5951_v60, %v5955_v56  ;;  %v3701_v53 = vand.u32 4294901760, %v6103_v18  ;;  %v3725_v60 = vand.u32 4294901760, %v6133_v35 }
 0x6f5   : > { %3315 = vmatpush1.msra.mxu1 %v5659_v25  ;;  %v6435_v25 = vand.u32 4294901760, %v5998_v34 }
 0x6f6   : > { %3385 = vmatprep.subr.mxu1 %v5623_v7  ;;  %3350 = vmatmul.mubr.f32.vlgmr.msra.gmra.mxu1 %v3010_v50  ;;  %v6081_v7 = vsub.f32 %v5915_v15, %v5918_v40  ;;  %v3726_v30 = vsub.f32 %v6133_v35, %v3725_v60 }
 0x6f7   : > { %3387 = vmatpush1.msra.mxu1 %v5625_v10  ;;  %3424 = vmatprep.mubr.f32.mxu1 %v5271_v27  ;;  %v6087_v10 = vsub.f32 %v5920_v33, %v5923_v43  ;;  %v3634_v12 = vsub.f32 %v5998_v34, %v6435_v25  ;;  %v3738_v25 = vsub.f32 %v6142_v26, %v3737_v29 }
 0x6f8   : > { %3389 = vmatprep.subr.mxu1 %v5630_v14  ;;  %v6092_v14 = vsub.f32 %v5925_v42, %v5929_v46  ;;  %v3677_v19 = vand.u32 4294901760, %v6081_v7 }
 0x6f9   : > { %3391 = vmatpush1.msra.mxu1 %v5636_v17  ;;  %v6098_v17 = vsub.f32 %v5931_v47, %v5935_v48  ;;  %v3683_v20 = vand.u32 4294901760, %v6087_v10  ;;  %v3635_v15 = vand.u32 4294901760, %v3634_v12  ;;  %v6436_v47 = vand.u32 4294901760, %v6030_v45 }
 0x6fa   : > { %3567 = vmatprep.subr.mxu1 %v5913_v8  ;;  %3426 = vmatmul.mubr.f32.vlgmr.msra.gmra.mxu1 %v3010_v50  ;;  %v3689_v37 = vand.u32 4294901760, %v6092_v14  ;;  %v3678_v50 = vsub.f32 %v6081_v7, %v3677_v19  ;;  %v6150_v8 = vsub.f32 %v5971_v4, %v5975_v5 }
 0x6fb   : > { %3569 = vmatpush1.msra.mxu1 %v5918_v40  ;;  %3630 = vmatprep.mubr.f32.mxu1 %v5271_v27  ;;  %v3695_v1 = vand.u32 4294901760, %v6098_v17  ;;  %v3684_v59 = vsub.f32 %v6087_v10, %v3683_v20  ;;  %v3673_v40 = vand.u32 4294901760, %v3672_v31 }
 0x6fc   : > { %3571 = vmatprep.subr.mxu1 %v5923_v43  ;;  %v3690_v33 = vsub.f32 %v6092_v14, %v3689_v37  ;;  %v3713_v43 = vand.u32 4294901760, %v6115_v23  ;;  %v3679_v61 = vand.u32 4294901760, %v3678_v50 }
 0x6fd   : > { %3573 = vmatpush1.msra.mxu1 %v5929_v46  ;;  %v3696_v42 = vsub.f32 %v6098_v17, %v3695_v1  ;;  %v3719_v46 = vand.u32 4294901760, %v6128_v21 }
 0x6fe   : > { %3575 = vmatprep.subr.mxu1 %v5935_v48  ;;  %v3645_v48 = vsub.f32 %v6030_v45, %v6436_v47  ;;  %v3691_v4 = vand.u32 4294901760, %v3690_v33  ;;  %v3756_v33 = vsub.f32 %v6185_v62, %v3755_v52 }
 0x6ff   : > { %3577 = vmatpush1.msra.mxu1 %v5941_v51  ;;  %v6172_v51 = vsub.f32 %v5989_v38, %v5993_v55  ;;  %v3720_v9 = vsub.f32 %v6128_v21, %v3719_v46  ;;  %v3743_v38 = vand.u32 4294901760, %v6167_v49 }
 0x700   : > { %3579 = vmatprep.subr.mxu1 %v5949_v58  ;;  %v3702_v58 = vsub.f32 %v6103_v18, %v3701_v53 }
 0x701   : > { %3581 = vmatpush1.msra.mxu1 %v5955_v56  ;;  %v3685_v56 = vand.u32 4294901760, %v3684_v59  ;;  %v3721_v31 = vand.u32 4294901760, %v3720_v9  ;;  %v3744_v50 = vsub.f32 %v6167_v49, %v3743_v38  ;;  %v3727_v59 = vand.u32 4294901760, %v3726_v30 }
 0x702   : > { %3583 = vmatprep.subr.mxu1 %v5961_v24  ;;  %v3731_v24 = vand.u32 4294901760, %v6150_v8  ;;  %v3482_v9 = vsub.s32 6, %v5586_v3 }
 0x703   : > { %3585 = vmatpush1.msra.mxu1 %v5969_v0  ;;  %v6190_v0 = vsub.f32 %v6004_v41, %v6008_v44  ;;  %v3709_v41 = vand.u32 4294901760, %v3708_v2 }
 0x704   : > { %3587 = vmatprep.subr.mxu1 %v5975_v5  ;;  %v3714_v5 = vsub.f32 %v6115_v23, %v3713_v43 }
 0x705   : > { %3589 = vmatpush1.msra.mxu1 %v5981_v32  ;;  %v3697_v32 = vand.u32 4294901760, %v3696_v42  ;;  %v3761_v12 = vand.u32 4294901760, %v6190_v0  ;;  %v3739_v42 = vand.u32 4294901760, %v3738_v25  ;;  %v6438_v25 = vld [vmem:[#allocation28_spill] sm:$0xff] }
 0x706   : > { %3591 = vmatprep.subr.mxu1 %v5987_v36  ;;  %v3646_v36 = vand.u32 4294901760, %v3645_v48  ;;  %v3715_v54 = vand.u32 4294901760, %v3714_v5  ;;  %v3745_v48 = vand.u32 4294901760, %v3744_v50 }
 0x707   : > { %3593 = vmatpush1.msra.mxu1 %v5993_v55  ;;  %v3703_v55 = vand.u32 4294901760, %v3702_v58  ;;  %v3762_v47 = vsub.f32 %v6190_v0, %v3761_v12  ;;  %v3757_v58 = vand.u32 4294901760, %v3756_v33 }
 0x708   : > { %3595 = vmatprep.subr.mxu1 %v6002_v39  ;;  %v3749_v39 = vand.u32 4294901760, %v6172_v51 }
 0x709   : > { %3597 = vmatpush1.msra.mxu1 %v6008_v44  ;;  %v3732_v44 = vsub.f32 %v6150_v8, %v3731_v24 }
 0x70a   : > { %3636 = vmatmul.mubr.f32.vlgmr.msra.gmra.mxu1 %v3635_v15  ;;  %3674 = vmatprep.subr.mxu1 %v3673_v40  ;;  %v3750_v15 = vsub.f32 %v6172_v51, %v3749_v39 }
 0x70b   : > { %3680 = vmatpush1.msra.mxu1 %v3679_v61  ;;  %3641 = vmatprep.mubr.f32.mxu1 %v5271_v27  ;;  %v3733_v40 = vand.u32 4294901760, %v3732_v44 }
 0x70c   : > { %3686 = vmatprep.subr.mxu1 %v3685_v56  ;;  %v3751_v61 = vand.u32 4294901760, %v3750_v15  ;;  %v3763_v56 = vand.u32 4294901760, %v3762_v47  ;;  %v6441_v47 = vld [vmem:[#allocation29_spill] sm:$0xff] }
 0x70d   : > { %3692 = vmatpush1.msra.mxu1 %v3691_v4 }
 0x70e   : > { %3698 = vmatprep.subr.mxu1 %v3697_v32  ;;  %3647 = vmatmul.mubr.f32.gmra.mxu1 %v3646_v36 }
 0x70f   : > { %3704 = vmatpush1.msra.mxu1 %v3703_v55  ;;  %3797 = vmatprep.mubr.f32.mxu1 %v5271_v27 }
 0x710   : > { %3710 = vmatprep.subr.mxu1 %v3709_v41 }
 0x711   : > { %3716 = vmatpush1.msra.mxu1 %v3715_v54  ;;  %v3483_v54 = vrot.slane %v5876_v11, %v3482_v9 }
 0x712   : > { %3722 = vmatprep.subr.mxu1 %v3721_v31  ;;  %v6439_v31 = vld [vmem:[#allocation30_spill] sm:$0xff] }
 0x713   : > { %3728 = vmatpush1.msra.mxu1 %v3727_v59  ;;  %v6440_v59 = vld [vmem:[#allocation26_spill] sm:$0xff] }
 0x714   : > { %3734 = vmatprep.subr.mxu1 %v3733_v40 }
 0x715   : > { %3740 = vmatpush1.msra.mxu1 %v3739_v42 }
 0x716   : > { %3746 = vmatprep.subr.mxu1 %v3745_v48 }
 0x717   : > { %3752 = vmatpush1.msra.mxu1 %v3751_v61 }
 0x718   : > { %3758 = vmatprep.subr.mxu1 %v3757_v58 }
 0x719   : > { %3764 = vmatpush1.msra.mxu1 %v3763_v56  ;;  %v6442_v56 = vld [vmem:[#allocation31_spill] sm:$0xff] }
 0x71a   : > { %3799 = vmatmul.mubr.f32.vlgmr.msra.gmra.mxu1 %v5966_v63  ;;  %3830 = vmatprep.subr.mxu1 %v6075_v13 }
 0x71b   : > { %3833 = vmatpush1.msra.mxu1 %v6081_v7  ;;  %3804 = vmatprep.mubr.f32.mxu1 %v5271_v27 }
 0x71c   : > { %3836 = vmatprep.subr.mxu1 %v6087_v10 }
 0x71d   : > { %3839 = vmatpush1.msra.mxu1 %v6092_v14 }
 0x71e   : > { %3806 = vmatmul.mubr.f32.gmra.mxu1 %v6025_v57  ;;  %3842 = vmatprep.subr.mxu1 %v6098_v17 }
 0x71f   : > { %3845 = vmatpush1.msra.mxu1 %v6103_v18  ;;  %3908 = vmatprep.mubr.f32.mxu1 %v5271_v27 }
 0x720   : > { %3848 = vmatprep.subr.mxu1 %v6110_v22 }
 0x721   : > { %3851 = vmatpush1.msra.mxu1 %v6115_v23 }
 0x722   : > { %3854 = vmatprep.subr.mxu1 %v6128_v21 }
 0x723   : > { %3857 = vmatpush1.msra.mxu1 %v6133_v35 }
 0x724   : > { %3860 = vmatprep.subr.mxu1 %v6150_v8 }
 0x725   : > { %3863 = vmatpush1.msra.mxu1 %v6142_v26 }
 0x726   : > { %3866 = vmatprep.subr.mxu1 %v6167_v49 }
 0x727   : > { %3869 = vmatpush1.msra.mxu1 %v6172_v51 }
 0x728   : > { %3872 = vmatprep.subr.mxu1 %v6185_v62 }
 0x729   : > { %3875 = vmatpush1.msra.mxu1 %v6190_v0 }
 0x72a   : > { %3911 = vmatmul.mubr.f32.vlgmr.msra.gmra.mxu1 %v5998_v34  ;;  %4043 = vmatprep.subr.mxu1 %v3671_v16 }
 0x72b   : > { %4047 = vmatpush1.msra.mxu1 %v3677_v19  ;;  %3916 = vmatprep.mubr.f32.mxu1 %v5271_v27 }
 0x72c   : > { %4051 = vmatprep.subr.mxu1 %v3683_v20 }
 0x72d   : > { %4055 = vmatpush1.msra.mxu1 %v3689_v37 }
 0x72e   : > { %3919 = vmatmul.mubr.f32.gmra.mxu1 %v6030_v45  ;;  %4059 = vmatprep.subr.mxu1 %v3695_v1 }
 0x72f   : > { %4063 = vmatpush1.msra.mxu1 %v3701_v53  ;;  %4136 = vmatprep.mubr.f32.mxu1 %v5271_v27 }
 0x730   : > { %4067 = vmatprep.subr.mxu1 %v3707_v28 }
 0x731   : > { %4071 = vmatpush1.msra.mxu1 %v3713_v43 }
 0x732   : > { %4075 = vmatprep.subr.mxu1 %v3719_v46 }
 0x733   : > { %4079 = vmatpush1.msra.mxu1 %v3725_v60 }
 0x734   : > { %4083 = vmatprep.subr.mxu1 %v3731_v24 }
 0x735   : > { %4087 = vmatpush1.msra.mxu1 %v3737_v29  ;;  %v3462_v29 = vrot.slane %v5876_v11, 4 }
 0x736   : > { %4091 = vmatprep.subr.mxu1 %v3743_v38  ;;  %v6437_v38 = vld [vmem:[#allocation27_spill] sm:$0xff] }
 0x737   : > { %4095 = vmatpush1.msra.mxu1 %v3749_v39  ;;  %v3463_v55 = vrot.slane %v6437_v38, 4  ;;  %v3487_v42 = vrot.slane %v6437_v38, %v3482_v9 }
 0x738   : > { %4099 = vmatprep.subr.mxu1 %v3755_v52 }
 0x739   : > { %4103 = vmatpush1.msra.mxu1 %v3761_v12 }
 0x73a   : > { %4138 = vmatmul.mubr.f32.vlgmr.msra.gmra.mxu1 %v5966_v63 }
 0x73b   : > { %4143 = vmatprep.mubr.f32.mxu1 %v5271_v27 }
 0x73e   : > { %4145 = vmatmul.mubr.f32.gmra.mxu1 %v6025_v57 }
 0x7a6   : > { %v3016_v34 = vpop.f32.mrf.mxu1 }
 0x7a8   : > { %v3018_v45 = vpop.f32.mrf.mxu1 }
 0x7aa   : > { %v3108_v13 = vpop.f32.mrf.mxu1 }
 0x7ab   : > { %v3109_v17 = vadd.f32 %v3108_v13, %v3016_v34 }
 0x7ac   : > { %v3110_v7 = vpop.f32.mrf.mxu1 }
 0x7ad   : > { %v3111_v19 = vadd.f32 %v3110_v7, %v3018_v45 }
 0x7ae   : > { %v3189_v10 = vpop.f32.mrf.mxu1 }
 0x7af   : > { %v3190_v20 = vadd.f32 %v3189_v10, %v3109_v17 }
 0x7b0   : > { %v3191_v14 = vpop.f32.mrf.mxu1 }
 0x7b1   : > { %v3192_v23 = vadd.f32 %v3191_v14, %v3111_v19 }
 0x7b2   : > { %v3267_v16 = vpop.f32.mrf.mxu1 }
 0x7b3   : > { %v3268_v37 = vadd.f32 %v3267_v16, %v3190_v20 }
 0x7b4   : > { %v3269_v18 = vpop.f32.mrf.mxu1 }
 0x7b5   : > { %v3270_v63 = vadd.f32 %v3269_v18, %v3192_v23 }
 0x7b6   : > { %v3351_v22 = vpop.f32.mrf.mxu1 }
 0x7b7   : > { %v3352_v21 = vadd.f32 %v3351_v22, %v3268_v37 }
 0x7b8   : > { %v3353_v1 = vpop.f32.mrf.mxu1 }
 0x7b9   : > { %v3354_v35 = vadd.f32 %v3353_v1, %v3270_v63  ;;  %v4010_v1 = vpop.f32.mrf.mxu0  ;;  %v3538_v63 = vsub.s32 7, %v5586_v3 }
 0x7ba   : > { %v3427_v27 = vpop.f32.mrf.mxu1 }
 0x7bb   : > { %v3428_v57 = vadd.f32 %v3427_v27, %v3352_v21 }
 0x7bc   : > { %v3429_v53 = vpop.f32.mrf.mxu1 }
 0x7bd   : > { %v3432_v26 = vmul.f32 0.001953125, %v3428_v57  ;;  %v3430_v28 = vadd.f32 %v3429_v53, %v3354_v35  ;;  %v4012_v35 = vpop.f32.mrf.mxu0  ;;  %v3539_v57 = vrot.slane %v5876_v11, %v3538_v63 }
 0x7bf   : > { %v3434_v8 = vmul.f32 %v3432_v26, %v3432_v26  ;;  %v3433_v43 = vmul.f32 0.001953125, %v3430_v28  ;;  %v3453_v36 = vrot.slane %v3432_v26, %v5589_v6  ;;  %v3543_v28 = vrot.slane %v6437_v38, %v3538_v63 }
 0x7c1   : > { %v3438_v46 = vrot.slane %v3434_v8, 7  ;;  %v3435_v49 = vmul.f32 %v3433_v43, %v3433_v43  ;;  %v3457_v41 = vrot.slane %v3433_v43, %v5589_v6  ;;  %v3458_v12 = vsub.f32 %v6438_v25, %v3453_v36 }
 0x7c2   : > { %v3460_v50 = vsub.f32 %v6439_v31, %v3453_v36 }
 0x7c3   : > { %v3442_v51 = vsub.f32 %v3432_v26, %v3438_v46  ;;  %v3439_v60 = vrot.slane %v3435_v49, 7  ;;  %v3459_v48 = vsub.f32 %v6441_v47, %v3457_v41  ;;  %v3461_v34 = vsub.f32 %v6442_v56, %v3457_v41  ;;  %v4019_v49 = vpop.f32.mrf.mxu0 }
 0x7c5   : > { %v3444_v2 = vmax.f32 %v3442_v51, 0.0  ;;  %v3443_v24 = vsub.f32 %v3433_v43, %v3439_v60  ;;  %v4021_v11 = vpop.f32.mrf.mxu0 }
 0x7c7   : > { %v3446_v62 = vadd.f32 1e-05, %v3444_v2  ;;  %v3445_v0 = vmax.f32 %v3443_v24, 0.0  ;;  %v4234_v38 = vpop.f32.mrf.mxu0 }
 0x7c9   : > { %4934 = vrsqrt.f32 %v3446_v62  ;;  %v3447_v4 = vadd.f32 1e-05, %v3445_v0 }
 0x7ca   : > { %v3637_v5 = vpop.f32.mrf.mxu1 }
 0x7cb   : > { %4936 = vrsqrt.f32 %v3447_v4  ;;  %v3638_v2 = vadd.f32 %v3637_v5, %v3539_v57 }
 0x7cc   : > { %v3639_v32 = vpop.f32.mrf.mxu1 }
 0x7cd   : > { %v3640_v62 = vadd.f32 %v3639_v32, %v3543_v28 }
 0x7ce   : > { %v3648_v39 = vpop.f32.mrf.mxu1 }
 0x7d0   : > { %v3650_v33 = vpop.f32.mrf.mxu1 }
 0x7d6   : > { %v4935_v30 = vpop.eup %4934 }
 0x7d7   : > { %v3466_v44 = vmul.f32 %v4935_v30, %v3462_v29  ;;  %v3649_v29 = vadd.f32 %v3648_v39, %v3539_v57 }
 0x7d8   : > { %v4937_v52 = vpop.eup %4936 }
 0x7d9   : > { %v3471_v15 = vrot.slane %v3466_v44, %v6440_v59  ;;  %v3467_v40 = vmul.f32 %v4937_v52, %v3463_v55  ;;  %v3651_v55 = vadd.f32 %v3650_v33, %v3543_v28 }
 0x7da   : > { %v3800_v10 = vpop.f32.mrf.mxu1 }
 0x7db   : > { %v3476_v61 = vmul.f32 %v3471_v15, %v3458_v12  ;;  %v3475_v58 = vrot.slane %v3467_v40, %v6440_v59  ;;  %v3478_v6 = vmul.f32 %v3471_v15, %v3460_v50  ;;  %v3801_v0 = vadd.f32 %v3800_v10, %v3638_v2  ;;  %v4236_v12 = vpop.f32.mrf.mxu0 }
 0x7dc   : > { %v3802_v22 = vpop.f32.mrf.mxu1 }
 0x7dd   : > { %v6298_v45 = vadd.f32 %v3483_v54, %v3476_v61  ;;  %v3477_v13 = vmul.f32 %v3475_v58, %v3459_v48  ;;  %v6300_v7 = vadd.f32 %v3483_v54, %v3478_v6  ;;  %v3479_v14 = vmul.f32 %v3475_v58, %v3461_v34  ;;  %v4241_v47 = vpop.f32.mrf.mxu0 }
 0x7de   : > { %v3807_v37 = vpop.f32.mrf.mxu1  ;;  %v3803_v9 = vadd.f32 %v3802_v22, %v3640_v62 }
 0x7df   : > { %v4584_v16 = vmul.f32 -1.442695, %v6298_v45  ;;  %v6303_v17 = vadd.f32 %v3487_v42, %v3477_v13  ;;  %v4586_v18 = vmul.f32 -1.442695, %v6300_v7  ;;  %v6306_v19 = vadd.f32 %v3487_v42, %v3479_v14 }
 0x7e0   : > { %v3809_v21 = vpop.f32.mrf.mxu1  ;;  %v3808_v30 = vadd.f32 %v3807_v37, %v3649_v29 }
 0x7e1   : > { %4938 = vpow2.f32 %v4584_v16  ;;  %v4585_v20 = vmul.f32 -1.442695, %v6303_v17  ;;  %v4587_v23 = vmul.f32 -1.442695, %v6306_v19  ;;  %v3810_v5 = vadd.f32 %v3809_v21, %v3651_v55 }
 0x7e2   : > { %4940 = vpow2.f32 %v4586_v18 }
 0x7e3   : > { %4942 = vpow2.f32 %v4585_v20 }
 0x7e4   : > { %4944 = vpow2.f32 %v4587_v23  ;;  %v4243_v23 = vpop.f32.mrf.mxu0 }
 0x7ea   : > { %v3912_v27 = vpop.f32.mrf.mxu1 }
 0x7eb   : > { %v3913_v36 = vadd.f32 %v3912_v27, %v3801_v0 }
 0x7ec   : > { %v3914_v46 = vpop.f32.mrf.mxu1 }
 0x7ed   : > { %v3915_v41 = vadd.f32 %v3914_v46, %v3803_v9  ;;  %v4011_v52 = vadd.f32 %v4010_v1, %v3913_v36 }
 0x7ee   : > { %v4939_v53 = vpop.eup %4938  ;;  %v3920_v4 = vpop.f32.mrf.mxu1 }
 0x7ef   : > { %v4941_v26 = vpop.eup %4940  ;;  %v3504_v8 = vadd.f32 1.0, %v4939_v53  ;;  %v3921_v54 = vadd.f32 %v3920_v4, %v3808_v30  ;;  %v4013_v32 = vadd.f32 %v4012_v35, %v3915_v41 }
 0x7f0   : > { %v4943_v43 = vpop.eup %4942  ;;  %v3506_v51 = vadd.f32 1.0, %v4941_v26  ;;  %v3922_v44 = vpop.f32.mrf.mxu1 }
 0x7f1   : > { %v4945_v60 = vpop.eup %4944  ;;  %4946 = vrcp.f32 %v3504_v8  ;;  %v3505_v24 = vadd.f32 1.0, %v4943_v43  ;;  %v3923_v31 = vadd.f32 %v3922_v44, %v3810_v5  ;;  %v4020_v15 = vadd.f32 %v4019_v49, %v3921_v54 }
 0x7f2   : > { %4948 = vrcp.f32 %v3506_v51  ;;  %v3507_v3 = vadd.f32 1.0, %v4945_v60 }
 0x7f3   : > { %4950 = vrcp.f32 %v3505_v24  ;;  %v4022_v33 = vadd.f32 %v4021_v11, %v3923_v31 }
 0x7f4   : > { %4952 = vrcp.f32 %v3507_v3 }
 0x7fa   : > { %v4139_v25 = vpop.f32.mrf.mxu1 }
 0x7fb   : > { %v4140_v50 = vadd.f32 %v4139_v25, %v4011_v52 }
 0x7fc   : > { %v4141_v59 = vpop.f32.mrf.mxu1 }
 0x7fd   : > { %v4142_v39 = vadd.f32 %v4141_v59, %v4013_v32  ;;  %v4235_v58 = vadd.f32 %v4234_v38, %v4140_v50 }
 0x7fe   : > { %v4947_v40 = vpop.eup %4946  ;;  %v4146_v42 = vpop.f32.mrf.mxu1 }
 0x7ff   : > { %v4949_v48 = vpop.eup %4948  ;;  %v3516_v61 = vmul.f32 %v4947_v40, %v6298_v45  ;;  %v4147_v6 = vadd.f32 %v4146_v42, %v4020_v15  ;;  %v4237_v34 = vadd.f32 %v4236_v12, %v4142_v39 }
 0x800   : > { %v4951_v56 = vpop.eup %4950  ;;  %v3518_v13 = vmul.f32 %v4949_v48, %v6300_v7  ;;  %v4148_v10 = vpop.f32.mrf.mxu1 }
 0x801   : > { %v4953_v14 = vpop.eup %4952  ;;  %v4246_v16 = vadd.f32 %v4235_v58, %v3516_v61  ;;  %v3517_v18 = vmul.f32 %v4951_v56, %v6303_v17  ;;  %v4242_v20 = vadd.f32 %v4241_v47, %v4147_v6  ;;  %v4149_v22 = vadd.f32 %v4148_v10, %v4022_v33 }
 0x802   : > { %v3519_v45 = vmul.f32 %v4953_v14, %v6306_v19 }
 0x803   : > { %4250 = vst [vmem:[%s442_s22] sm:$0xff] %v4246_v16  ;;  %v4247_v37 = vadd.f32 %v4237_v34, %v3517_v18  ;;  %v4248_v7 = vadd.f32 %v4242_v20, %v3518_v13  ;;  %v4244_v1 = vadd.f32 %v4243_v23, %v4149_v22 }
 0x805   : > { %4251 = vst [vmem:[%s442_s22 + $0x8] sm:$0xff] %v4247_v37  ;;  %4252 = vst [vmem:[%s442_s22 + $0x10] sm:$0xff] %v4248_v7  ;;  %v4249_v17 = vadd.f32 %v4244_v1, %v3519_v45 }
 0x807   : > { %4253 = vst [vmem:[%s442_s22 + $0x18] sm:$0xff] %v4249_v17 }
 0x808   : > { %5183 = shalt.err (!%p5180_p11)
}
 0x809   : > { %s5184_s14 = scalar_lea.hbm %s6324_s26, 512  ;;  %s5188_s12 = scalar_lea.hbm %s6375_s8, 1024 }
 0x80a   : > { %p5185_p12 = scmp.ne.s32.totalorder %s6324_s26, %s5184_s14  ;;  %p5189_p9 = scmp.lt.s32.totalorder %s6324_s26, %s6375_s8 }
 0x80b   : > { %p5190_p8 = scmp.lt.s32.totalorder %s5188_s12, %s5184_s14 }
 0x80c   : > { %p5186_p13 = pnand %p5185_p12, %p6443_p2 }
 0x80d   : > { %p5191_p4 = por %p5190_p8, %p5189_p9 }
 0x80e   : > { %p5187_p5 = pneg %p5186_p13 }
 0x810   : > { %p5192_p0 = pnand %p5191_p4, %p5187_p5 }
 0x812   : > { %5195 = shalt.err (!%p5192_p0)
}
 0x813   : > { %s5274_s24 = smov 256   ;;  %s5275_s21 = smov 16  }
 0x814   : > { %4627 = dma.vmem_to_hbm [thread:$0]  (%p6443_p2), %s6319_s23, 512, %s6324_s26, %s4255_s11, %s5274_s24, %s5274_s24, %s5275_s21  }
 0x815 PF: > { %s4283_s15 = sand.u32 1, %s5242_s27   ;;  %p6444_p1 = scmp.ne.s32.totalorder %s6411_s19, 0 }
 0x816   : > { %p6445_p6 = scmp.ge.s32.totalorder %s5254_s30, 2  ;;  %s4284_s22 = scalar_lea.sflag [#allocation6], %s4283_s15 }
 0x818   : > { %p4656_p10 = pnand %p6445_p6, %p6444_p1 }
 0x81a   : > { %p4657_p7 = pneg %p4656_p10 }
 0x81c   : > { %5237 = dma.done.wait (%p4657_p7), %s4284_s22, 512  }
 0x81d   : > { %5239 = vsyncadd (%p4657_p7), %s4284_s22, 4294966784  ;;  %p27_p3 = scmp.ge.s32.totalorder %s5425_s18, 4   ;;  %s6446_s27 = smov %s5246_s28 }
 0x81e   : > { %s6447_s28 = smov %s5250_s29  ;;  %s6448_s29 = smov %s5436_s9 }
 0x81f   : > { %s6449_s30 = smov %s5425_s18  ;;  %29 = sbr.rel (!%p27_p3) target bundleno = 18 (0x12), region = 138 }
 0x824   :  { %4289 = vsyncpa [#allocation5], 1 }
 0x825   :  { %4291 = vsyncpa [#allocation5 + $0x1], 1 }
 0x826   :  { %4292 = vsyncpa [#allocation8], 1 }
 0x827   :  { %4294 = vsyncpa [#allocation8 + $0x1], 1 }
 0x828   :  { %4295 = vsyncpa [#allocation11], 1 }
 0x829   :  { %4296 = vsyncpa [#allocation14], 1 }
 0x82a   :  { %4297 = vsyncpa [#allocation17], 1 }
 0x82b   :  { %4298 = vsyncpa [#allocation6], 1 }
 0x82c   :  { %4300 = vsyncpa [#allocation6 + $0x1], 1 }

</bundles_post_ra>
